<compile_context>
chip_gen: v6e
topology: v6e:2x2x1
jax: 0.10.0
libtpu: 0.0.40
codegen_flags: <defaults>
</compile_context>

<pallas_src>
import functools

import jax
import jax.numpy as jnp
from jax import lax
from jax.experimental import pallas as pl
from jax.experimental.pallas import tpu as pltpu


def deepset_kernel(x_ref, w1_ref, b1_ref, w2_ref, b2_ref, o_ref, *, chunk_batches):
    # x_ref:  (Bblk, N, C)         one block of batch elements
    # w1_ref: (C, 2*mid)           [w1a | w2a]        (fused first layer)
    # b1_ref: (1, 2*mid)           [b1a | b2a]
    # w2_ref: (2*mid, 2*out_f)     [[w1b, 0],[0, w2b]] (block-diag second layer)
    # b2_ref: (1, 2*out_f)         [b1b | b2b]
    # o_ref:  (Bblk, N, out_f//4)
    bblk, n, c = x_ref.shape
    two_mid = w1_ref.shape[1]
    mid = two_mid // 2
    out_f = w2_ref.shape[1] // 2
    pooled_f = o_ref.shape[-1]

    cb = chunk_batches                   # whole batches per in-kernel chunk
    n_chunks = bblk // cb
    crows = cb * n                       # rows (set elements) per chunk

    # ---- loop-invariant values, hoisted out of the chunk loop -------------
    w1 = w1_ref[...]
    w2 = w2_ref[...]
    b1 = b1_ref[...]
    b2 = b2_ref[...]
    lane = lax.broadcasted_iota(jnp.int32, (1, two_mid), 1)
    # Exact 0/1 lane-compaction matrix for the pool (compile-time constant).
    r_idx = lax.broadcasted_iota(jnp.int32, (out_f, pooled_f), 0)
    c_idx = lax.broadcasted_iota(jnp.int32, (out_f, pooled_f), 1)
    sel = (r_idx == 4 * c_idx).astype(jnp.float32)

    def chunk_body(ci, carry):
        b0 = pl.multiple_of(ci * cb, cb)              # batch offset of chunk
        x3 = x_ref[pl.ds(b0, cb), :, :]               # (cb, N, C)
        x_flat = x3.reshape(crows, c)                 # free: N % 8 == 0

        # ---- fused first layer: h_raw = x @ [w1a | w2a]  (ONE MXU pass) ---
        h_raw = jnp.dot(x_flat.astype(w1.dtype), w1,
                        preferred_element_type=jnp.float32)      # (crows, 2*mid)

        # Branch 2 uses (x - mean_set(x)).  By linearity,
        #   mean(x) @ w2a == mean over the set of (x @ w2a)
        # i.e. the per-batch mean of h_raw's w2a lanes, so no second matmul.
        corr = jnp.mean(h_raw.reshape(cb, n, two_mid), axis=1)   # (cb, 2*mid)
        corr = jnp.where(lane >= mid, corr, 0.0)                 # keep w2a half
        bias1 = b1 - corr                                        # (cb, 2*mid)
        bias_rows = jnp.broadcast_to(
            bias1[:, None, :], (cb, n, two_mid)).reshape(crows, two_mid)
        h = jnp.maximum(h_raw + bias_rows, 0.0)                  # ReLU, flat

        # ---- fused second layer: z = [h1 @ w1b | h2 @ w2b] ----------------
        z = jnp.dot(h.astype(w2.dtype), w2,
                    preferred_element_type=jnp.float32) + b2     # (crows, 2*out_f)
        t = jnp.tanh(z)
        y = t[:, :out_f] + t[:, out_f:]                          # add branches

        # Row-wise L2 norm (torch.norm(p='fro', dim=1)); rsqrt -> EUP slot.
        # eps only guards exactly-zero rows (reference would produce NaN/inf).
        y = y * lax.rsqrt(jnp.sum(y * y, axis=-1, keepdims=True) + 1e-30)

        # ---- max_pool1d(kernel=4, stride=4) along the feature lanes -------
        m = jnp.maximum(y, pltpu.roll(y, out_f - 1, axis=1))     # == roll -1
        m = jnp.maximum(m, pltpu.roll(m, out_f - 2, axis=1))     # == roll -2
        pooled = jnp.dot(m, sel, preferred_element_type=jnp.float32)

        # NOTE: pooled_f (=4) lanes -> masked stores; densifying would need a
        # cross-tile relayout / a lane-dense HBM interface (see TODO above).
        o_ref[pl.ds(b0, cb), :, :] = (
            pooled.reshape(cb, n, pooled_f).astype(o_ref.dtype))
        return carry

    # Real loop (not unrolled) so per-chunk live ranges stay bounded.
    lax.fori_loop(0, n_chunks, chunk_body, 0)


def _target_grid_steps():
    """1 grid step on single-TensorCore chips (v5e/v6e); 2 on v7x (2 TCs)."""
    try:
        kind = jax.devices()[0].device_kind.lower()
    except Exception:
        return 1
    return 2 if ("v7" in kind or "7x" in kind) else 1


def _largest_divisor_leq(value, limit):
    best = 1
    for d in range(1, value + 1):
        if value % d == 0 and d <= limit:
            best = d
    return best


def _padded_block_bytes(shape, dtype, buffers=2):
    """VMEM bytes for a (8,128)-padded, double-buffered block."""
    s = list(shape)
    s[-1] = -(-s[-1] // 128) * 128
    if len(s) >= 2:
        s[-2] = -(-s[-2] // 8) * 8
    total = 1
    for d in s:
        total *= d
    return buffers * total * jnp.dtype(dtype).itemsize


def deepset_layer(x, params, *, chunk_rows=128, mxu_dtype=None):
    """x: (B, N, C) with C = original_in_features + in_features.

    params = (w1a, b1a, w1b, b1b, w2a, b2a, w2b, b2b); Conv1d(k=1) weights
    stored transposed as (C_in, C_out), biases as (1, C_out).
    mxu_dtype: optionally jnp.bfloat16 to halve weight/activation MXU operand
    width (f32 accumulate); default keeps f32 parity with the reference.
    """
    B, N, C = x.shape
    w1a, b1a, w1b, b1b, w2a, b2a, w2b, b2b = params
    mid = w1a.shape[1]
    out_f = w1b.shape[1]
    assert out_f % 4 == 0, "max_pool1d(4, 4) requires out_features % 4 == 0"
    assert N % 8 == 0, "set size N must be a multiple of 8 (free (B,N,C)<->(B*N,C) reshape)"
    pooled_f = out_f // 4

    # Pack 8 params into 4 slabs (fewer DMA descriptors / VMEM buffers).
    w_dtype = mxu_dtype if mxu_dtype is not None else w1a.dtype
    W1 = jnp.concatenate([w1a, w2a], axis=1).astype(w_dtype)       # (C, 2*mid)
    B1 = jnp.concatenate([b1a, b2a], axis=1)                       # (1, 2*mid), f32
    zpad = jnp.zeros((mid, out_f), w1b.dtype)
    W2 = jnp.concatenate(
        [jnp.concatenate([w1b, zpad], axis=1),
         jnp.concatenate([zpad, w2b], axis=1)], axis=0).astype(w_dtype)  # (2*mid, 2*out_f)
    B2 = jnp.concatenate([b1b, b2b], axis=1)                       # (1, 2*out_f), f32

    # Generation-aware grid: a second step on a single-TC chip is pure
    # overhead (extra step + writeback), so only split for v7x's 2 cores.
    steps = _target_grid_steps()
    if B % steps != 0:
        steps = 1
    Bblk = B // steps

    # In-kernel chunking over whole batches (~chunk_rows rows per chunk)
    # bounds vreg live ranges without adding grid steps.
    cb = _largest_divisor_leq(Bblk, max(1, chunk_rows // N))

    # VMEM budget check (v7x: 64 MiB total / 32 MiB default scoped). Blocks
    # are lane-padded to 128 and double-buffered by the pipeline.
    vmem_need = (
        _padded_block_bytes((Bblk, N, C), x.dtype)
        + _padded_block_bytes((Bblk, N, pooled_f), x.dtype)
        + _padded_block_bytes(W1.shape, W1.dtype)
        + _padded_block_bytes(B1.shape, B1.dtype)
        + _padded_block_bytes(W2.shape, W2.dtype)
        + _padded_block_bytes(B2.shape, B2.dtype))
    vmem_limit = None
    if vmem_need > 16 * 1024 * 1024:
        vmem_limit = min(int(vmem_need * 3 // 2), 48 * 1024 * 1024)

    kernel = functools.partial(deepset_kernel, chunk_batches=cb)

    # NOTE: the weight slabs have constant index_maps, so Pallas skips their
    # re-DMA across grid steps; pl.Buffered(1) would also halve their (tiny)
    # VMEM double-buffers but is left at the default for lowering robustness.
    return pl.pallas_call(
        kernel,
        out_shape=jax.ShapeDtypeStruct((B, N, pooled_f), x.dtype),
        grid=(steps,),
        in_specs=[
            pl.BlockSpec((Bblk, N, C), lambda b: (b, 0, 0)),       # x block
            pl.BlockSpec(W1.shape, lambda b: (0, 0)),
            pl.BlockSpec(B1.shape, lambda b: (0, 0)),
            pl.BlockSpec(W2.shape, lambda b: (0, 0)),
            pl.BlockSpec(B2.shape, lambda b: (0, 0)),
        ],
        out_specs=pl.BlockSpec((Bblk, N, pooled_f), lambda b: (b, 0, 0)),
        compiler_params=pltpu.CompilerParams(
            dimension_semantics=("parallel",),
            vmem_limit_bytes=vmem_limit),
    )(x, W1, B1, W2, B2)


if __name__ == "__main__":
    # Module hyper-parameters (consistent with the PyTorch __init__).
    original_in_features, in_features, out_features = 8, 8, 16
    C = original_in_features + in_features                 # Conv1d in channels
    mid = (original_in_features + in_features + out_features) // 2
    B, N = 32, 16                                           # batch, set size

    key = jax.random.PRNGKey(0)
    ks = jax.random.split(key, 9)
    x = jax.random.normal(ks[0], (B, N, C), jnp.float32)

    # Deterministic parameter init (uniform, Conv1d-style fan-in bound).
    def init(k, shape, fan_in):
        bound = 1.0 / (fan_in ** 0.5)
        return jax.random.uniform(k, shape, jnp.float32, -bound, bound)

    w1a = init(ks[1], (C, mid), C);              b1a = init(ks[2], (1, mid), C)
    w1b = init(ks[3], (mid, out_features), mid); b1b = init(ks[4], (1, out_features), mid)
    w2a = init(ks[5], (C, mid), C);              b2a = init(ks[6], (1, mid), C)
    w2b = init(ks[7], (mid, out_features), mid); b2b = init(ks[8], (1, out_features), mid)
    params = (w1a, b1a, w1b, b1b, w2a, b2a, w2b, b2b)

    out = jax.block_until_ready(deepset_layer(x, params))

    # Pure-JAX reference mirroring the PyTorch forward.
    def reference(xx):
        mean = xx.mean(axis=1, keepdims=True)               # mean over set elems

        def branch(z, wa, ba, wb, bb):
            return jnp.tanh(jnp.maximum(z @ wa + ba, 0.0) @ wb + bb)

        y = branch(xx, w1a, b1a, w1b, b1b) + branch(xx - mean, w2a, b2a, w2b, b2b)
        y = y / jnp.sqrt(jnp.sum(y * y, axis=-1, keepdims=True))
        Bq, Nq, O = y.shape
        return jnp.max(y.reshape(Bq, Nq, O // 4, 4), axis=-1)

    ref_out = reference(x)
    assert out.shape == (B, N, out_features // 4), out.shape
    err = float(jnp.max(jnp.abs(out - ref_out)))
    assert jnp.allclose(out, ref_out, atol=1e-4, rtol=1e-4), err
    print("KERNEL_OK")
</pallas_src>

<mosaic_0001>
module attributes {stable_mosaic.version = 11 : i64} {
  func.func @deepset_kernel(%arg0: i32, %arg1: memref<32x16x16xf32, #tpu.memory_space<vmem>>, %arg2: memref<16x32xf32, #tpu.memory_space<vmem>>, %arg3: memref<1x32xf32, #tpu.memory_space<vmem>>, %arg4: memref<32x32xf32, #tpu.memory_space<vmem>>, %arg5: memref<1x32xf32, #tpu.memory_space<vmem>>, %arg6: memref<32x16x4xf32, #tpu.memory_space<vmem>>) attributes {dimension_semantics = [#tpu.dimension_semantics<parallel>], iteration_bounds = array<i64: 1>, scalar_prefetch = 0 : i64, scratch_operands = 0 : i64, tpu.core_type = #tpu.core_type<tc>, window_params = [{transform_indices = @transform_0, window_bounds = array<i64: 32, 16, 16>}, {pipeline_mode = #tpu.pipeline_mode<synchronous>, transform_indices = @transform_1, window_bounds = array<i64: 16, 32>}, {pipeline_mode = #tpu.pipeline_mode<synchronous>, transform_indices = @transform_2, window_bounds = array<i64: 1, 32>}, {pipeline_mode = #tpu.pipeline_mode<synchronous>, transform_indices = @transform_3, window_bounds = array<i64: 32, 32>}, {pipeline_mode = #tpu.pipeline_mode<synchronous>, transform_indices = @transform_4, window_bounds = array<i64: 1, 32>}, {transform_indices = @transform_5, window_bounds = array<i64: 32, 16, 4>}]} {
    %c0 = arith.constant 0 : index
    %c0_0 = arith.constant 0 : index
    %0 = vector.load %arg2[%c0, %c0_0] : memref<16x32xf32, #tpu.memory_space<vmem>>, vector<16x32xf32>
    %c0_1 = arith.constant 0 : index
    %c0_2 = arith.constant 0 : index
    %1 = vector.load %arg4[%c0_1, %c0_2] : memref<32x32xf32, #tpu.memory_space<vmem>>, vector<32x32xf32>
    %c0_3 = arith.constant 0 : index
    %c0_4 = arith.constant 0 : index
    %2 = vector.load %arg3[%c0_3, %c0_4] : memref<1x32xf32, #tpu.memory_space<vmem>>, vector<1x32xf32>
    %c0_5 = arith.constant 0 : index
    %c0_6 = arith.constant 0 : index
    %3 = vector.load %arg5[%c0_5, %c0_6] : memref<1x32xf32, #tpu.memory_space<vmem>>, vector<1x32xf32>
    %4 = tpu.iota {dimensions = array<i32: 1>} : vector<1x32xi32>
    %5 = tpu.iota {dimensions = array<i32: 0>} : vector<16x4xi32>
    %6 = tpu.iota {dimensions = array<i32: 1>} : vector<16x4xi32>
    %c4_i32 = arith.constant 4 : i32
    %7 = vector.broadcast %c4_i32 : i32 to vector<16x4xi32>
    %8 = arith.muli %7, %6 : vector<16x4xi32>
    %9 = arith.cmpi eq, %5, %8 : vector<16x4xi32>
    %10 = arith.extui %9 : vector<16x4xi1> to vector<16x4xi32>
    %11 = arith.sitofp %10 : vector<16x4xi32> to vector<16x4xf32>
    %c0_i32 = arith.constant 0 : i32
    %c4_i32_7 = arith.constant 4 : i32
    %12 = arith.addi %c0_i32, %c4_i32_7 : i32
    %c1_i32 = arith.constant 1 : i32
    scf.for %arg7 = %c0_i32 to %12 step %c1_i32  : i32 {
      %c8_i32 = arith.constant 8 : i32
      %13 = arith.muli %arg7, %c8_i32 : i32
      %14 = tpu.assume_multiple %13, 8 : i32
      %15 = arith.index_cast %14 : i32 to index
      %c0_9 = arith.constant 0 : index
      %c0_10 = arith.constant 0 : index
      %16 = vector.load %arg1[%15, %c0_9, %c0_10] : memref<32x16x16xf32, #tpu.memory_space<vmem>>, vector<8x16x16xf32>
      %17 = vector.shape_cast %16 : vector<8x16x16xf32> to vector<128x16xf32>
      %cst = arith.constant dense<0.000000e+00> : vector<128x32xf32>
      %18 = tpu.matmul %17, %0, %cst {dimension_numbers = #tpu.dot_dimension_numbers<[1], [0], [0], [1], [0, 0, 1, 1], [], []>} : vector<128x16xf32>, vector<16x32xf32>, vector<128x32xf32> -> vector<128x32xf32>
      %19 = vector.shape_cast %18 : vector<128x32xf32> to vector<8x16x32xf32>
      %cst_11 = arith.constant dense<0.000000e+00> : vector<8x32xf32>
      %20 = vector.multi_reduction <add>, %19, %cst_11 [1] : vector<8x16x32xf32> to vector<8x32xf32>
      %cst_12 = arith.constant 1.600000e+01 : f32
      %21 = vector.broadcast %cst_12 : f32 to vector<8x32xf32>
      %22 = arith.divf %20, %21 : vector<8x32xf32>
      %c16_i32 = arith.constant 16 : i32
      %23 = vector.broadcast %c16_i32 : i32 to vector<1x32xi32>
      %24 = arith.cmpi sge, %4, %23 : vector<1x32xi32>
      %cst_13 = arith.constant 0.000000e+00 : f32
      %25 = vector.shape_cast %24 : vector<1x32xi1> to vector<1x32xi1>
      %26 = vector.broadcast %25 : vector<1x32xi1> to vector<8x32xi1>
      %27 = vector.broadcast %cst_13 : f32 to vector<8x32xf32>
      %28 = arith.select %26, %22, %27 : vector<8x32xi1>, vector<8x32xf32>
      %29 = vector.broadcast %2 : vector<1x32xf32> to vector<8x32xf32>
      %30 = arith.subf %29, %28 : vector<8x32xf32>
      %31 = vector.shape_cast %30 : vector<8x32xf32> to vector<8x1x32xf32>
      %32 = vector.shape_cast %31 : vector<8x1x32xf32> to vector<8x1x32xf32>
      %33 = vector.broadcast %32 : vector<8x1x32xf32> to vector<8x16x32xf32>
      %34 = vector.shape_cast %33 : vector<8x16x32xf32> to vector<128x32xf32>
      %35 = arith.addf %18, %34 : vector<128x32xf32>
      %cst_14 = arith.constant 0.000000e+00 : f32
      %36 = vector.broadcast %cst_14 : f32 to vector<128x32xf32>
      %37 = arith.maximumf %35, %36 : vector<128x32xf32>
      %cst_15 = arith.constant dense<0.000000e+00> : vector<128x32xf32>
      %38 = tpu.matmul %37, %1, %cst_15 {dimension_numbers = #tpu.dot_dimension_numbers<[1], [0], [0], [1], [0, 0, 1, 1], [], []>} : vector<128x32xf32>, vector<32x32xf32>, vector<128x32xf32> -> vector<128x32xf32>
      %39 = vector.broadcast %3 : vector<1x32xf32> to vector<128x32xf32>
      %40 = arith.addf %38, %39 : vector<128x32xf32>
      %41 = math.tanh %40 : vector<128x32xf32>
      %42 = vector.extract_strided_slice %41 {offsets = [0, 0], sizes = [128, 16], strides = [1, 1]} : vector<128x32xf32> to vector<128x16xf32>
      %43 = vector.extract_strided_slice %41 {offsets = [0, 16], sizes = [128, 16], strides = [1, 1]} : vector<128x32xf32> to vector<128x16xf32>
      %44 = arith.addf %42, %43 : vector<128x16xf32>
      %45 = arith.mulf %44, %44 : vector<128x16xf32>
      %cst_16 = arith.constant dense<0.000000e+00> : vector<128xf32>
      %46 = vector.multi_reduction <add>, %45, %cst_16 [1] : vector<128x16xf32> to vector<128xf32>
      %47 = vector.shape_cast %46 : vector<128xf32> to vector<128x1xf32>
      %cst_17 = arith.constant 1.000000e-30 : f32
      %48 = vector.broadcast %cst_17 : f32 to vector<128x1xf32>
      %49 = arith.addf %47, %48 : vector<128x1xf32>
      %50 = math.rsqrt %49 : vector<128x1xf32>
      %51 = vector.broadcast %50 : vector<128x1xf32> to vector<128x16xf32>
      %52 = arith.mulf %44, %51 : vector<128x16xf32>
      %c15_i32 = arith.constant 15 : i32
      %53 = tpu.dynamic_rotate %52 by %c15_i32 dim 1 : vector<128x16xf32>, i32 -> vector<128x16xf32>
      %54 = arith.maximumf %52, %53 : vector<128x16xf32>
      %c14_i32 = arith.constant 14 : i32
      %55 = tpu.dynamic_rotate %54 by %c14_i32 dim 1 : vector<128x16xf32>, i32 -> vector<128x16xf32>
      %56 = arith.maximumf %54, %55 : vector<128x16xf32>
      %cst_18 = arith.constant dense<0.000000e+00> : vector<128x4xf32>
      %57 = tpu.matmul %56, %11, %cst_18 {dimension_numbers = #tpu.dot_dimension_numbers<[1], [0], [0], [1], [0, 0, 1, 1], [], []>} : vector<128x16xf32>, vector<16x4xf32>, vector<128x4xf32> -> vector<128x4xf32>
      %58 = vector.shape_cast %57 : vector<128x4xf32> to vector<8x16x4xf32>
      %59 = arith.index_cast %14 : i32 to index
      %c0_19 = arith.constant 0 : index
      %c0_20 = arith.constant 0 : index
      %60 = vector.load %arg6[%59, %c0_19, %c0_20] : memref<32x16x4xf32, #tpu.memory_space<vmem>>, vector<8x16x4xf32>
      tpu.vector_store %arg6[%59, %c0_19, %c0_20], %58 {strides = array<i32>} : memref<32x16x4xf32, #tpu.memory_space<vmem>>, vector<8x16x4xf32>,
    }
    %c4_i32_8 = arith.constant 4 : i32
    return
  }
  func.func @transform_0(%arg0: i32) -> (i32, i32, i32) {
    %c0_i32 = arith.constant 0 : i32
    %c0_i32_0 = arith.constant 0 : i32
    %c0_i32_1 = arith.constant 0 : i32
    return %arg0, %c0_i32, %c0_i32_0 : i32, i32, i32
  }
  func.func @transform_1(%arg0: i32) -> (i32, i32) {
    %c0_i32 = arith.constant 0 : i32
    %c0_i32_0 = arith.constant 0 : i32
    %c0_i32_1 = arith.constant 0 : i32
    return %c0_i32, %c0_i32_0 : i32, i32
  }
  func.func @transform_2(%arg0: i32) -> (i32, i32) {
    %c0_i32 = arith.constant 0 : i32
    %c0_i32_0 = arith.constant 0 : i32
    %c0_i32_1 = arith.constant 0 : i32
    return %c0_i32, %c0_i32_0 : i32, i32
  }
  func.func @transform_3(%arg0: i32) -> (i32, i32) {
    %c0_i32 = arith.constant 0 : i32
    %c0_i32_0 = arith.constant 0 : i32
    %c0_i32_1 = arith.constant 0 : i32
    return %c0_i32, %c0_i32_0 : i32, i32
  }
  func.func @transform_4(%arg0: i32) -> (i32, i32) {
    %c0_i32 = arith.constant 0 : i32
    %c0_i32_0 = arith.constant 0 : i32
    %c0_i32_1 = arith.constant 0 : i32
    return %c0_i32, %c0_i32_0 : i32, i32
  }
  func.func @transform_5(%arg0: i32) -> (i32, i32, i32) {
    %c0_i32 = arith.constant 0 : i32
    %c0_i32_0 = arith.constant 0 : i32
    %c0_i32_1 = arith.constant 0 : i32
    return %arg0, %c0_i32, %c0_i32_0 : i32, i32, i32
  }
}

</mosaic_0001>

<bundles_post_ra>
// kernel: tpu_custom_call.1
= control target key start
LH: loop header
LB: loop body
LE: loop exit
PB: predicated region body
PF: predicated region fallthrough
CT: control target
= control target key end

     0   :  { %v28_v0 = vlaneseq  ;;  %s2590_s0 = inlined_call_operand.vmem [shape: f32[32,16,16], index: 0, kind: input, shape index: {}]   ;;  %s2591_s1 = inlined_call_operand.vmem [shape: f32[16,32], index: 1, kind: input, shape index: {}]   ;;  %s2592_s2 = inlined_call_operand.vmem [shape: f32[1,32], index: 2, kind: input, shape index: {}]   ;;  %s2593_s3 = inlined_call_operand.vmem [shape: f32[32,32], index: 3, kind: input, shape index: {}]   ;;  %s2594_s4 = inlined_call_operand.vmem [shape: f32[1,32], index: 4, kind: input, shape index: {}]   ;;  %s2595_s5 = inlined_call_operand.vmem [shape: f32[32,16,4], index: 5, kind: output, shape index: {}]  }
   0x1   :  { %v1811_v1 = vld [vmem:[%s2591_s1] sm:$0xff]  ;;  %v1816_v2 = vld [vmem:[%s2591_s1 + $0x8] sm:$0xff]  ;;  %v1831_v5 = vld [vmem:[%s2593_s3 + $0x10] sm:$0xff] }
   0x2   :  { %v1821_v3 = vld [vmem:[%s2593_s3] sm:$0xff]  ;;  %v1826_v4 = vld [vmem:[%s2593_s3 + $0x8] sm:$0xff]  ;;  %v1836_v6 = vld [vmem:[%s2593_s3 + $0x18] sm:$0xff]  ;;  %v1838_v7 = vand.u32 127, %v28_v0  ;;  %v1840_v8 = vshrl.u32 %v28_v0, 7 }
   0x3   :  { %v1845_v9 = vld [vmem:[%s2592_s2] ss:$0 sm:$0xff]  ;;  %s1863_s2 = smov 0  }
   0x4   :  { %v1850_v10 = vld [vmem:[%s2594_s4] ss:$0 sm:$0xff]  ;;  %v32_v11 = vadd.s32 8, %v1840_v8  ;;  %v33_v12 = vmul.u32 4, %v1838_v7 }
   0x6   :  { %vm1855_vm0 = vcmp.eq.s32.totalorder %v1840_v8, %v33_v12  ;;  %vm1859_vm1 = vcmp.eq.s32.totalorder %v32_v11, %v33_v12 }
   0x7 LB: > { %1594 = vmatprep.subr.mxu0 %v1816_v2  ;;  %1682 = vmatprep.subr.mxu1 %v1816_v2  ;;  %s1537_s3 = sshll.u32 %s1770_s2, 7  ;;  %vm65_vm2 = vcmask 130048   ;;  %vm259_vm3 = vcmask 261120   ;;  %vm352_vm4 = vcmask 1041409   ;;  %vm354_vm5 = vcmask 1042434   ;;  %s1773_s10 = smov 112   ;;  %s1770_s2 = sphi %s1863_s2, %s45_s2  }
   0x8   : > { %1595 = vmatpush3.msra.mxu0 %v1816_v2  ;;  %1684 = vmatpush3.msra.mxu1 %v1816_v2  ;;  %s1882_s9 = scalar_lea.vmem %s2590_s0, %s1537_s3  ;;  %vm356_vm6 = vcmask 1043459   ;;  %vm358_vm7 = vcmask 1044484   ;;  %vm360_vm8 = vcmask 1045509   ;;  %vm362_vm9 = vcmask 1046534   ;;  %s1774_s11 = smov 16  }
   0x9   : > { %1596 = vmatprep.subr.mxu0 %v1811_v1  ;;  %1683 = vmatprep.subr.mxu1 %v1811_v1  ;;  %v49_v15 = vld [vmem:[%s1882_s9] sm:$0xff]  ;;  %v50_v17 = vld [vmem:[%s1882_s9 + $0x8] sm:$0xff]  ;;  %v51_v19 = vld [vmem:[%s1882_s9 + $0x10] sm:$0xff]  ;;  %vm364_vm10 = vcmask 1047559   ;;  %vm341_vm11 = vcmp.ge.s32.totalorder %v1838_v7, 16  ;;  %vm904_vm12 = vcmask 1047680   ;;  %s2553_s16 = scalar_lea.vmem %s2595_s5, %s1537_s3 }
   0xa   : > { %1597 = vmatpush3.msra.mxu0 %v1811_v1  ;;  %1685 = vmatpush3.msra.mxu1 %v1811_v1  ;;  %v57_v16 = vld [vmem:[%s1882_s9 + $0x40] sm:$0xff]  ;;  %v58_v18 = vld [vmem:[%s1882_s9 + $0x48] sm:$0xff]  ;;  %v59_v20 = vld [vmem:[%s1882_s9 + $0x50] sm:$0xff]  ;;  %s1775_s12 = smov 127   ;;  %s1777_s13 = smov 126   ;;  %vm1451_vm13 = vcmask 31744  }
   0xb   : > { %1622 = vmatprep.subr.mxu1 %v1836_v6  ;;  %1598 = vmatprep.mubr.msk.f32.mxu0 %vm65_vm2, %v49_v15  ;;  %v52_v21 = vld [vmem:[%s1882_s9 + $0x18] sm:$0xff]  ;;  %v53_v23 = vld [vmem:[%s1882_s9 + $0x20] sm:$0xff]  ;;  %v54_v25 = vld [vmem:[%s1882_s9 + $0x28] sm:$0xff]  ;;  %s45_s2 = sadd.s32 1, %s1770_s2  }
   0xc   : > { %1610 = vmatprep.mubr.msk.f32.mxu1 %vm65_vm2, %v57_v16  ;;  %1599 = vmatmul.mubr.msk.f32.vlgmr.msra.gmra.mxu0 %vm65_vm2, %v50_v17  ;;  %v60_v22 = vld [vmem:[%s1882_s9 + $0x58] sm:$0xff]  ;;  %v61_v24 = vld [vmem:[%s1882_s9 + $0x60] sm:$0xff]  ;;  %v62_v26 = vld [vmem:[%s1882_s9 + $0x68] sm:$0xff]  ;;  %p42_p0 = scmp.ge.s32.totalorder %s45_s2, 4  }
   0xd   : > { %1611 = vmatmul.mubr.msk.f32.vlgmr.msra.gmra.mxu1 %vm65_vm2, %v58_v18  ;;  %1601 = vmatprep.mubr.msk.f32.mxu0 %vm65_vm2, %v51_v19  ;;  %v55_v27 = vld [vmem:[%s1882_s9 + $0x30] sm:$0xff]  ;;  %v56_v29 = vld [vmem:[%s1882_s9 + $0x38] sm:$0xff] }
   0xe   : > { %1613 = vmatprep.mubr.msk.f32.mxu1 %vm65_vm2, %v59_v20  ;;  %1623 = vmatpush3.msra.mxu1 %v1836_v6  ;;  %v63_v28 = vld [vmem:[%s1882_s9 + $0x70] sm:$0xff]  ;;  %v64_v30 = vld [vmem:[%s1882_s9 + $0x78] sm:$0xff] }
   0xf   : > { %1624 = vmatprep.subr.mxu1 %v1831_v5 }
  0x10   : > { %1602 = vmatmul.mubr.msk.f32.gmra.mxu0 %vm65_vm2, %v52_v21  ;;  %1625 = vmatpush3.msra.mxu1 %v1831_v5 }
  0x11   : > { %1614 = vmatmul.mubr.msk.f32.gmra.mxu1 %vm65_vm2, %v60_v22  ;;  %1604 = vmatprep.mubr.msk.f32.mxu0 %vm65_vm2, %v53_v23 }
  0x12   : > { %1616 = vmatprep.mubr.msk.f32.mxu1 %vm65_vm2, %v61_v24  ;;  %1626 = vmatprep.subr.mxu1 %v1826_v4 }
  0x13   : > { %1627 = vmatpush3.msra.mxu1 %v1826_v4 }
  0x14   : > { %1605 = vmatmul.mubr.msk.f32.gmra.mxu0 %vm65_vm2, %v54_v25  ;;  %1628 = vmatprep.subr.mxu1 %v1821_v3 }
  0x15   : > { %1617 = vmatmul.mubr.msk.f32.gmra.mxu1 %vm65_vm2, %v62_v26  ;;  %1607 = vmatprep.mubr.msk.f32.mxu0 %vm65_vm2, %v55_v27 }
  0x16   : > { %1619 = vmatprep.mubr.msk.f32.mxu1 %vm65_vm2, %v63_v28  ;;  %1629 = vmatpush3.msra.mxu1 %v1821_v3 }
  0x18   : > { %1608 = vmatmul.mubr.msk.f32.gmra.mxu0 %vm65_vm2, %v56_v29 }
  0x19   : > { %1620 = vmatmul.mubr.msk.f32.gmra.mxu1 %vm65_vm2, %v64_v30 }
  0xcc   : > { %v1924_v31 = vpop.f32.mrf.mxu0 }
  0xcd   : > { %v1926_v32 = vpop.f32.mrf.mxu1  ;;  %v261_v36 = vsel %vm259_vm3, %v1924_v31, 0.0 }
  0xce   : > { %v297_v33 = vsel %vm259_vm3, %v1926_v32, 0.0  ;;  %v1930_v34 = vpop.f32.mrf.mxu0 }
  0xcf   : > { %v1932_v35 = vpop.f32.mrf.mxu1  ;;  %v260_v37 = vsel %vm259_vm3, %v1930_v34, 0.0 }
  0xd0   : > { %v296_v38 = vsel %vm259_vm3, %v1932_v35, 0.0  ;;  %v262_v39 = vadd.f32 %v261_v36, %v260_v37  ;;  %v1940_v41 = vpop.f32.mrf.mxu0 }
  0xd1   : > { %v298_v40 = vadd.f32 %v297_v33, %v296_v38  ;;  %v1942_v42 = vpop.f32.mrf.mxu1  ;;  %v270_v48 = vsel %vm259_vm3, %v1940_v41, 0.0 }
  0xd2   : > { %v306_v43 = vsel %vm259_vm3, %v1942_v42, 0.0  ;;  %v263_v44 = vrot.slane %v262_v39, 4  ;;  %v1946_v46 = vpop.f32.mrf.mxu0 }
  0xd3   : > { %v299_v45 = vrot.slane %v298_v40, 4  ;;  %v1948_v47 = vpop.f32.mrf.mxu1  ;;  %v269_v49 = vsel %vm259_vm3, %v1946_v46, 0.0 }
  0xd4   : > { %v305_v50 = vsel %vm259_vm3, %v1948_v47, 0.0  ;;  %v264_v51 = vadd.f32 %v263_v44, %v262_v39  ;;  %v271_v52 = vadd.f32 %v270_v48, %v269_v49  ;;  %v1956_v54 = vpop.f32.mrf.mxu0 }
  0xd5   : > { %v307_v53 = vadd.f32 %v306_v43, %v305_v50  ;;  %v1958_v55 = vpop.f32.mrf.mxu1  ;;  %v300_v56 = vadd.f32 %v299_v45, %v298_v40  ;;  %v279_v15 = vsel %vm259_vm3, %v1956_v54, 0.0 }
  0xd6   : > { %v272_v57 = vrot.slane %v271_v52, 4  ;;  %v315_v59 = vsel %vm259_vm3, %v1958_v55, 0.0  ;;  %v1962_v60 = vpop.f32.mrf.mxu0  ;;  %v265_v0 = vrot.slane %v264_v51, 2 }
  0xd7   : > { %v308_v58 = vrot.slane %v307_v53, 4  ;;  %v1964_v61 = vpop.f32.mrf.mxu1  ;;  %v278_v62 = vsel %vm259_vm3, %v1962_v60, 0.0  ;;  %v301_v20 = vrot.slane %v300_v56, 2 }
  0xd8   : > { %v314_v63 = vsel %vm259_vm3, %v1964_v61, 0.0  ;;  %v273_v11 = vadd.f32 %v272_v57, %v271_v52  ;;  %v1972_v16 = vpop.f32.mrf.mxu0  ;;  %v280_v18 = vadd.f32 %v279_v15, %v278_v62  ;;  %v266_v29 = vadd.f32 %v265_v0, %v264_v51 }
  0xd9   : > { %v309_v12 = vadd.f32 %v308_v58, %v307_v53  ;;  %v1974_v17 = vpop.f32.mrf.mxu1  ;;  %v316_v19 = vadd.f32 %v315_v59, %v314_v63  ;;  %v288_v36 = vsel %vm259_vm3, %v1972_v16, 0.0  ;;  %v302_v52 = vadd.f32 %v301_v20, %v300_v56 }
  0xda   : > { %v274_v21 = vrot.slane %v273_v11, 2  ;;  %v324_v22 = vsel %vm259_vm3, %v1974_v17, 0.0  ;;  %v1978_v23 = vpop.f32.mrf.mxu0  ;;  %v281_v25 = vrot.slane %v280_v18, 4  ;;  %v267_v50 = vrot.slane %v266_v29, 1 }
  0xdb   : > { %v1980_v24 = vpop.f32.mrf.mxu1  ;;  %v317_v26 = vrot.slane %v316_v19, 4  ;;  %v287_v27 = vsel %vm259_vm3, %v1978_v23, 0.0  ;;  %v310_v33 = vrot.slane %v309_v12, 2 }
  0xdc   : > { %v323_v28 = vsel %vm259_vm3, %v1980_v24, 0.0  ;;  %v275_v30 = vadd.f32 %v274_v21, %v273_v11  ;;  %v282_v37 = vadd.f32 %v281_v25, %v280_v18  ;;  %v289_v39 = vadd.f32 %v288_v36, %v287_v27 }
  0xdd   : > { %v318_v38 = vadd.f32 %v317_v26, %v316_v19  ;;  %v325_v40 = vadd.f32 %v324_v22, %v323_v28  ;;  %v311_v53 = vadd.f32 %v310_v33, %v309_v12  ;;  %v268_v15 = vadd.f32 %v267_v50, %v266_v29 }
  0xde   : > { %v276_v43 = vrot.slane %v275_v30, 1  ;;  %v283_v44 = vrot.slane %v282_v37, 2  ;;  %v290_v48 = vrot.slane %v289_v39, 4  ;;  %v303_v18 = vrot.slane %v302_v52, 1 }
  0xdf   : > { %v319_v45 = vrot.slane %v318_v38, 2  ;;  %v326_v49 = vrot.slane %v325_v40, 4  ;;  %v312_v19 = vrot.slane %v311_v53, 1  ;;  %v333_v20 = vmul.f32 0.0625, %v268_v15 }
  0xe0   : > { %v284_v57 = vadd.f32 %v283_v44, %v282_v37  ;;  %v291_v58 = vadd.f32 %v290_v48, %v289_v39  ;;  %v277_v62 = vadd.f32 %v276_v43, %v275_v30  ;;  %v304_v56 = vadd.f32 %v303_v18, %v302_v52 }
  0xe1   : > { %v327_v51 = vadd.f32 %v326_v49, %v325_v40  ;;  %v320_v59 = vadd.f32 %v319_v45, %v318_v38  ;;  %v313_v33 = vadd.f32 %v312_v19, %v311_v53  ;;  %v1772_v37 = vmov 1966171168  }
  0xe2   : > { %v285_v63 = vrot.slane %v284_v57, 1  ;;  %v292_v0 = vrot.slane %v291_v58, 2  ;;  %v334_v27 = vmul.f32 0.0625, %v277_v62  ;;  %v378_v38 = vunpack.c.l.s4 %v1772_v37 }
  0xe3   : > { %v328_v11 = vrot.slane %v327_v51, 2  ;;  %v321_v26 = vrot.slane %v320_v59, 1  ;;  %v337_v44 = vmul.f32 0.0625, %v304_v56  ;;  %v338_v48 = vmul.f32 0.0625, %v313_v33 }
  0xe4   : > { %v286_v21 = vadd.f32 %v285_v63, %v284_v57  ;;  %v293_v22 = vadd.f32 %v292_v0, %v291_v58  ;;  %v353_v29 = vsel %vm352_vm4, %v334_v27, %v333_v20  ;;  %v379_v50 = vunpack.c.0.s8 %v378_v38 }
  0xe5   : > { %v329_v25 = vadd.f32 %v328_v11, %v327_v51  ;;  %v322_v39 = vadd.f32 %v321_v26, %v320_v59  ;;  %v427_v11 = vsub.s32 0, %v1840_v8 }
  0xe6   : > { %v294_v28 = vrot.slane %v293_v22, 1  ;;  %v335_v12 = vmul.f32 0.0625, %v286_v21  ;;  %v382_v62 = vsub.s32 %v379_v50, %v1840_v8 }
  0xe7   : > { %v330_v36 = vrot.slane %v329_v25, 1  ;;  %v339_v52 = vmul.f32 0.0625, %v322_v39 }
  0xe8   : > { %v295_v30 = vadd.f32 %v294_v28, %v293_v22  ;;  %v355_v45 = vsel %vm354_vm5, %v335_v12, %v353_v29 }
  0xe9   : > { %v331_v43 = vadd.f32 %v330_v36, %v329_v25 }
  0xea   : > { %v336_v40 = vmul.f32 0.0625, %v295_v30 }
  0xeb   : > { %v340_v53 = vmul.f32 0.0625, %v331_v43 }
  0xec   : > { %v357_v49 = vsel %vm356_vm6, %v336_v40, %v355_v45 }
  0xed   : > { %v359_v57 = vsel %vm358_vm7, %v337_v44, %v357_v49 }
  0xee   : > { %v361_v58 = vsel %vm360_vm8, %v338_v48, %v359_v57 }
  0xef   : > { %v363_v51 = vsel %vm362_vm9, %v339_v52, %v361_v58 }
  0xf0   : > { %v365_v59 = vsel %vm364_vm10, %v340_v53, %v363_v51 }
  0xf1   : > { %v367_v63 = vsel %vm341_vm11, %v365_v59, 0.0 }
  0xf2   : > { %v374_v0 = vsub.f32 %v1845_v9, %v367_v63 }
  0xf4   : > { %v383_v15 = vrot.slane %v374_v0, %v382_v62  ;;  %v376_v18 = vcombine.high %v374_v0, %v374_v0 }
  0xf6   : > { %v399_v19 = vrot.slane %v383_v15, %v382_v62  ;;  %v391_v21 = vcombine.high %v383_v15, %v383_v15  ;;  %v390_v27 = vrot.slane %v376_v18, %v382_v62 }
  0xf8   : > { %v428_v22 = vrot.slane %v399_v19, %v427_v11  ;;  %v413_v25 = vrot.slane %v391_v21, %v382_v62  ;;  %v421_v26 = vcombine.high %v399_v19, %v399_v19  ;;  %v392_v39 = vcombine.high %v390_v27, %v390_v27 }
  0xf9   : > { %v406_v43 = vrot.slane %v390_v27, %v382_v62 }
  0xfa   : > { %v465_v28 = vadd.f32 %v428_v22, %v1930_v34  ;;  %v466_v36 = vadd.f32 %v1924_v31, %v428_v22  ;;  %v432_v56 = vrot.slane %v413_v25, %v427_v11  ;;  %v436_v12 = vrot.slane %v421_v26, %v427_v11 }
  0xfb   : > { %v423_v20 = vcombine.high %v413_v25, %v413_v25  ;;  %v420_v45 = vrot.slane %v392_v39, %v382_v62  ;;  %v422_v53 = vcombine.high %v406_v43, %v406_v43 }
  0xfc   : > { %v481_v33 = vmax.f32 %v465_v28, 0.0  ;;  %v482_v30 = vmax.f32 %v466_v36, 0.0  ;;  %v467_v37 = vadd.f32 %v432_v56, %v1946_v46  ;;  %v468_v38 = vadd.f32 %v1940_v41, %v432_v56 }
  0xfd   : > { %v469_v29 = vadd.f32 %v436_v12, %v1962_v60  ;;  %v440_v40 = vrot.slane %v423_v20, %v427_v11  ;;  %v470_v44 = vadd.f32 %v1956_v54, %v436_v12  ;;  %v444_v41 = vrot.slane %v406_v43, %v427_v11 }
  0xfe   : > { %1630 = vmatprep.mubr.msk.f32.mxu1 %vm259_vm3, %v481_v33  ;;  %v483_v34 = vmax.f32 %v467_v37, 0.0  ;;  %v484_v31 = vmax.f32 %v468_v38, 0.0  ;;  %v448_v50 = vrot.slane %v420_v45, %v427_v11  ;;  %v424_v58 = vcombine.high %v420_v45, %v420_v45 }
  0xff   : > { %1631 = vmatmul.mubr.msk.f32.vlgmr.msra.gmra.mxu1 %vm259_vm3, %v482_v30  ;;  %v485_v48 = vmax.f32 %v469_v29, 0.0  ;;  %v471_v46 = vadd.f32 %v440_v40, %v1978_v23  ;;  %v486_v60 = vmax.f32 %v470_v44, 0.0  ;;  %v472_v49 = vadd.f32 %v1972_v16, %v440_v40 }
 0x100   : > { %1633 = vmatprep.mubr.msk.f32.mxu1 %vm259_vm3, %v483_v34  ;;  %v473_v57 = vadd.f32 %v444_v41, %v1932_v35  ;;  %v474_v23 = vadd.f32 %v1926_v32, %v444_v41  ;;  %v475_v59 = vadd.f32 %v448_v50, %v1948_v47  ;;  %v452_v62 = vrot.slane %v422_v53, %v427_v11 }
 0x101   : > { %v487_v52 = vmax.f32 %v471_v46, 0.0  ;;  %v488_v54 = vmax.f32 %v472_v49, 0.0  ;;  %v476_v35 = vadd.f32 %v1942_v42, %v448_v50  ;;  %v456_v63 = vrot.slane %v424_v58, %v427_v11 }
 0x102   : > { %v489_v51 = vmax.f32 %v473_v57, 0.0  ;;  %v490_v16 = vmax.f32 %v474_v23, 0.0  ;;  %v491_v0 = vmax.f32 %v475_v59, 0.0  ;;  %v477_v15 = vadd.f32 %v452_v62, %v1964_v61 }
 0x103   : > { %1634 = vmatmul.mubr.msk.f32.gmra.mxu1 %vm259_vm3, %v484_v31  ;;  %v492_v32 = vmax.f32 %v476_v35, 0.0  ;;  %v478_v18 = vadd.f32 %v1958_v55, %v452_v62  ;;  %v479_v47 = vadd.f32 %v456_v63, %v1980_v24  ;;  %v480_v42 = vadd.f32 %v1974_v17, %v456_v63 }
 0x104   : > { %1636 = vmatprep.mubr.msk.f32.mxu1 %vm259_vm3, %v485_v48  ;;  %v493_v19 = vmax.f32 %v477_v15, 0.0 }
 0x105   : > { %v494_v11 = vmax.f32 %v478_v18, 0.0  ;;  %v495_v21 = vmax.f32 %v479_v47, 0.0  ;;  %v496_v61 = vmax.f32 %v480_v42, 0.0 }
 0x107   : > { %1637 = vmatmul.mubr.msk.f32.gmra.mxu1 %vm259_vm3, %v486_v60 }
 0x108   : > { %1639 = vmatprep.mubr.msk.f32.mxu1 %vm259_vm3, %v487_v52 }
 0x10b   : > { %1640 = vmatmul.mubr.msk.f32.gmra.mxu1 %vm259_vm3, %v488_v54 }
 0x10c   : > { %1642 = vmatprep.mubr.msk.f32.mxu1 %vm259_vm3, %v489_v51 }
 0x10f   : > { %1643 = vmatmul.mubr.msk.f32.gmra.mxu1 %vm259_vm3, %v490_v16 }
 0x110   : > { %1645 = vmatprep.mubr.msk.f32.mxu1 %vm259_vm3, %v491_v0 }
 0x113   : > { %1646 = vmatmul.mubr.msk.f32.gmra.mxu1 %vm259_vm3, %v492_v32 }
 0x114   : > { %1648 = vmatprep.mubr.msk.f32.mxu1 %vm259_vm3, %v493_v19 }
 0x117   : > { %1649 = vmatmul.mubr.msk.f32.gmra.mxu1 %vm259_vm3, %v494_v11 }
 0x118   : > { %1651 = vmatprep.mubr.msk.f32.mxu1 %vm259_vm3, %v495_v21 }
 0x11b   : > { %1652 = vmatmul.mubr.msk.f32.gmra.mxu1 %vm259_vm3, %v496_v61 }
 0x1bf   : > { %v1632_v22 = vpop.f32.mrf.mxu1 }
 0x1c0   : > { %v623_v25 = vadd.f32 %v1632_v22, %v1850_v10 }
 0x1c1   : > { %v617_v55 = vpop.f32.mrf.mxu1 }
 0x1c2   : > { %v618_v24 = vadd.f32 %v1850_v10, %v617_v55 }
 0x1c3   : > { %v1635_v26 = vpop.f32.mrf.mxu1 }
 0x1c4   : > { %1700 = vtanh.f32 %v618_v24  ;;  %v633_v28 = vadd.f32 %v1635_v26, %v1850_v10 }
 0x1c5   : > { %v627_v27 = vpop.f32.mrf.mxu1  ;;  %1702 = vtanh.f32 %v623_v25 }
 0x1c6   : > { %v628_v17 = vadd.f32 %v1850_v10, %v627_v27 }
 0x1c7   : > { %v1638_v36 = vpop.f32.mrf.mxu1 }
 0x1c8   : > { %1704 = vtanh.f32 %v628_v17  ;;  %v643_v20 = vadd.f32 %v1638_v36, %v1850_v10 }
 0x1c9   : > { %v637_v56 = vpop.f32.mrf.mxu1  ;;  %1706 = vtanh.f32 %v633_v28 }
 0x1ca   : > { %v638_v12 = vadd.f32 %v1850_v10, %v637_v56 }
 0x1cb   : > { %v1641_v33 = vpop.f32.mrf.mxu1 }
 0x1cc   : > { %1708 = vtanh.f32 %v638_v12  ;;  %v653_v38 = vadd.f32 %v1641_v33, %v1850_v10 }
 0x1cd   : > { %v647_v30 = vpop.f32.mrf.mxu1  ;;  %1710 = vtanh.f32 %v643_v20 }
 0x1ce   : > { %v648_v37 = vadd.f32 %v1850_v10, %v647_v30 }
 0x1cf   : > { %v1644_v39 = vpop.f32.mrf.mxu1 }
 0x1d0   : > { %1712 = vtanh.f32 %v648_v37  ;;  %v663_v34 = vadd.f32 %v1644_v39, %v1850_v10 }
 0x1d1   : > { %v1701_v29 = vpop.eup %1700  ;;  %v657_v40 = vpop.f32.mrf.mxu1  ;;  %1714 = vtanh.f32 %v653_v38 }
 0x1d2   : > { %v658_v43 = vadd.f32 %v1850_v10, %v657_v40  ;;  %728 = vrot.lane.b32.xlu0 %v1701_v29, %s1773_s10  ;;  %v1703_v44 = vpop.eup %1702 }
 0x1d3   : > { %v1647_v31 = vpop.f32.mrf.mxu1 }
 0x1d4   : > { %1716 = vtanh.f32 %v658_v43  ;;  %v673_v41 = vadd.f32 %v1647_v31, %v1850_v10 }
 0x1d5   : > { %v1705_v45 = vpop.eup %1704  ;;  %v667_v48 = vpop.f32.mrf.mxu1  ;;  %1718 = vtanh.f32 %v663_v34 }
 0x1d6   : > { %v668_v46 = vadd.f32 %v1850_v10, %v667_v48  ;;  %730 = vrot.lane.b32.xlu0 %v1703_v44, %s1773_s10  ;;  %732 = vrot.lane.b32.xlu1 %v1705_v45, %s1773_s10  ;;  %v1707_v49 = vpop.eup %1706 }
 0x1d7   : > { %v1650_v60 = vpop.f32.mrf.mxu1 }
 0x1d8   : > { %1720 = vtanh.f32 %v668_v46  ;;  %v683_v53 = vadd.f32 %v1650_v60, %v1850_v10 }
 0x1d9   : > { %v1709_v50 = vpop.eup %1708  ;;  %v677_v52 = vpop.f32.mrf.mxu1  ;;  %1722 = vtanh.f32 %v673_v41 }
 0x1da   : > { %v678_v57 = vadd.f32 %v1850_v10, %v677_v52  ;;  %736 = vrot.lane.b32.xlu0 %v1709_v50, %s1773_s10  ;;  %734 = vrot.lane.b32.xlu1 %v1707_v49, %s1773_s10  ;;  %v1711_v23 = vpop.eup %1710 }
 0x1db   : > { %v1653_v54 = vpop.f32.mrf.mxu1 }
 0x1dc   : > { %1724 = vtanh.f32 %v678_v57  ;;  %v693_v16 = vadd.f32 %v1653_v54, %v1850_v10 }
 0x1dd   : > { %v1713_v58 = vpop.eup %1712  ;;  %v687_v51 = vpop.f32.mrf.mxu1  ;;  %1726 = vtanh.f32 %v683_v53 }
 0x1de   : > { %v688_v59 = vadd.f32 %v1850_v10, %v687_v51  ;;  %738 = vrot.lane.b32.xlu1 %v1711_v23, %s1773_s10  ;;  %740 = vrot.lane.b32.xlu0 %v1713_v58, %s1773_s10  ;;  %v1715_v62 = vpop.eup %1714 }
 0x1e0   : > { %1728 = vtanh.f32 %v688_v59 }
 0x1e1   : > { %v1717_v35 = vpop.eup %1716  ;;  %1730 = vtanh.f32 %v693_v16 }
 0x1e2   : > { %742 = vrot.lane.b32.xlu1 %v1715_v62, %s1773_s10  ;;  %744 = vrot.lane.b32.xlu0 %v1717_v35, %s1773_s10  ;;  %v1719_v63 = vpop.eup %1718 }
 0x1e5   : > { %v1721_v0 = vpop.eup %1720 }
 0x1e6   : > { %746 = vrot.lane.b32.xlu1 %v1719_v63, %s1773_s10  ;;  %748 = vrot.lane.b32.xlu0 %v1721_v0, %s1773_s10  ;;  %v2051_v15 = vpop.eup %1722 }
 0x1e9   : > { %v2053_v32 = vpop.eup %1724 }
 0x1ea   : > { %750 = vrot.lane.b32.xlu1 %v2051_v15, %s1773_s10  ;;  %752 = vrot.lane.b32.xlu0 %v2053_v32, %s1773_s10  ;;  %v2059_v18 = vpop.eup %1726 }
 0x1ed   : > { %v2061_v47 = vpop.eup %1728 }
 0x1ee   : > { %754 = vrot.lane.b32.xlu1 %v2059_v18, %s1773_s10  ;;  %756 = vrot.lane.b32.xlu0 %v2061_v47, %s1773_s10  ;;  %v2067_v19 = vpop.eup %1730 }
 0x1f2   : > { %758 = vrot.lane.b32.xlu1 %v2067_v19, %s1773_s10 }
 0x244   : > { %v729_v42 = vpop.permute.xlu0 %728 }
 0x245   : > { %v2071_v11 = vadd.f32 %v1701_v29, %v729_v42 }
 0x247   : > { %v792_v21 = vmul.f32 %v2071_v11, %v2071_v11 }
 0x248   : > { %v731_v61 = vpop.permute.xlu0 %730  ;;  %v733_v22 = vpop.permute.xlu1 %732 }
 0x249   : > { %v2075_v55 = vadd.f32 %v1703_v44, %v731_v61  ;;  %v2077_v24 = vadd.f32 %v1705_v45, %v733_v22  ;;  %v808_v25 = vsel %vm65_vm2, %v792_v21, 0.0 }
 0x24a   : > { %809 = vadd.xlane.f32.xlu0 %v808_v25 }
 0x24b   : > { %v793_v26 = vmul.f32 %v2075_v55, %v2075_v55  ;;  %v794_v27 = vmul.f32 %v2077_v24, %v2077_v24 }
 0x24c   : > { %v737_v17 = vpop.permute.xlu0 %736  ;;  %v735_v28 = vpop.permute.xlu1 %734 }
 0x24d   : > { %v2084_v36 = vadd.f32 %v1709_v50, %v737_v17  ;;  %v2086_v56 = vadd.f32 %v1707_v49, %v735_v28  ;;  %v811_v12 = vsel %vm65_vm2, %v793_v26, 0.0  ;;  %v814_v20 = vsel %vm65_vm2, %v794_v27, 0.0 }
 0x24e   : > { %812 = vadd.xlane.f32.xlu1 %v811_v12  ;;  %815 = vadd.xlane.f32.xlu0 %v814_v20 }
 0x24f   : > { %v796_v33 = vmul.f32 %v2084_v36, %v2084_v36  ;;  %v795_v30 = vmul.f32 %v2086_v56, %v2086_v56 }
 0x250   : > { %v739_v37 = vpop.permute.xlu1 %738  ;;  %v741_v38 = vpop.permute.xlu0 %740 }
 0x251   : > { %v2094_v39 = vadd.f32 %v1711_v23, %v739_v37  ;;  %v2096_v29 = vadd.f32 %v1713_v58, %v741_v38  ;;  %v820_v40 = vsel %vm65_vm2, %v796_v33, 0.0  ;;  %v817_v43 = vsel %vm65_vm2, %v795_v30, 0.0 }
 0x252   : > { %821 = vadd.xlane.f32.xlu1 %v820_v40  ;;  %818 = vadd.xlane.f32.xlu0 %v817_v43 }
 0x253   : > { %v798_v34 = vmul.f32 %v2096_v29, %v2096_v29  ;;  %v797_v31 = vmul.f32 %v2094_v39, %v2094_v39 }
 0x254   : > { %v743_v44 = vpop.permute.xlu1 %742  ;;  %v745_v45 = vpop.permute.xlu0 %744 }
 0x255   : > { %v2104_v48 = vadd.f32 %v1715_v62, %v743_v44  ;;  %v2106_v46 = vadd.f32 %v1717_v35, %v745_v45  ;;  %v826_v41 = vsel %vm65_vm2, %v798_v34, 0.0  ;;  %v823_v60 = vsel %vm65_vm2, %v797_v31, 0.0 }
 0x256   : > { %827 = vadd.xlane.f32.xlu1 %v826_v41  ;;  %824 = vadd.xlane.f32.xlu0 %v823_v60 }
 0x257   : > { %v800_v49 = vmul.f32 %v2106_v46, %v2106_v46  ;;  %v799_v50 = vmul.f32 %v2104_v48, %v2104_v48 }
 0x258   : > { %v747_v52 = vpop.permute.xlu1 %746  ;;  %v749_v57 = vpop.permute.xlu0 %748 }
 0x259   : > { %v2114_v53 = vadd.f32 %v1719_v63, %v747_v52  ;;  %v2116_v54 = vadd.f32 %v1721_v0, %v749_v57  ;;  %v832_v23 = vsel %vm65_vm2, %v800_v49, 0.0  ;;  %v829_v58 = vsel %vm65_vm2, %v799_v50, 0.0 }
 0x25a   : > { %833 = vadd.xlane.f32.xlu1 %v832_v23  ;;  %830 = vadd.xlane.f32.xlu0 %v829_v58 }
 0x25b   : > { %v802_v51 = vmul.f32 %v2116_v54, %v2116_v54  ;;  %v801_v59 = vmul.f32 %v2114_v53, %v2114_v53 }
 0x25c   : > { %v751_v62 = vpop.permute.xlu1 %750  ;;  %v753_v16 = vpop.permute.xlu0 %752 }
 0x25d   : > { %v2125_v35 = vadd.f32 %v2051_v15, %v751_v62  ;;  %v2128_v63 = vadd.f32 %v2053_v32, %v753_v16  ;;  %v838_v0 = vsel %vm65_vm2, %v802_v51, 0.0  ;;  %v835_v42 = vsel %vm65_vm2, %v801_v59, 0.0 }
 0x25e   : > { %839 = vadd.xlane.f32.xlu1 %v838_v0  ;;  %836 = vadd.xlane.f32.xlu0 %v835_v42 }
 0x25f   : > { %v804_v21 = vmul.f32 %v2128_v63, %v2128_v63  ;;  %v803_v61 = vmul.f32 %v2125_v35, %v2125_v35 }
 0x260   : > { %v755_v22 = vpop.permute.xlu1 %754  ;;  %v757_v25 = vpop.permute.xlu0 %756 }
 0x261   : > { %v2137_v15 = vadd.f32 %v2059_v18, %v755_v22  ;;  %v2140_v32 = vadd.f32 %v2061_v47, %v757_v25  ;;  %v844_v26 = vsel %vm65_vm2, %v804_v21, 0.0  ;;  %v841_v27 = vsel %vm65_vm2, %v803_v61, 0.0 }
 0x262   : > { %845 = vadd.xlane.f32.xlu1 %v844_v26  ;;  %842 = vadd.xlane.f32.xlu0 %v841_v27 }
 0x263   : > { %v805_v17 = vmul.f32 %v2137_v15, %v2137_v15  ;;  %v806_v28 = vmul.f32 %v2140_v32, %v2140_v32 }
 0x264   : > { %v759_v12 = vpop.permute.xlu1 %758 }
 0x265   : > { %v2149_v20 = vadd.f32 %v2067_v19, %v759_v12  ;;  %v847_v18 = vsel %vm65_vm2, %v805_v17, 0.0  ;;  %v850_v47 = vsel %vm65_vm2, %v806_v28, 0.0 }
 0x266   : > { %848 = vadd.xlane.f32.xlu0 %v847_v18  ;;  %851 = vadd.xlane.f32.xlu1 %v850_v47 }
 0x267   : > { %v807_v33 = vmul.f32 %v2149_v20, %v2149_v20 }
 0x269   : > { %v853_v30 = vsel %vm65_vm2, %v807_v33, 0.0 }
 0x26a   : > { %854 = vadd.xlane.f32.xlu0 %v853_v30 }
 0x2d3   : > { %v810_v37 = vpop.xlane.xlu0 %809 }
 0x2d4   : > { %v856_v38 = vadd.f32 1e-30, %v810_v37 }
 0x2d6   : > { %1732 = vrsqrt.f32 %v856_v38 }
 0x2d7   : > { %v813_v40 = vpop.xlane.xlu1 %812  ;;  %v816_v43 = vpop.xlane.xlu0 %815 }
 0x2d8   : > { %v857_v34 = vadd.f32 1e-30, %v813_v40  ;;  %v858_v19 = vadd.f32 1e-30, %v816_v43 }
 0x2da   : > { %1734 = vrsqrt.f32 %v857_v34 }
 0x2db   : > { %1736 = vrsqrt.f32 %v858_v19  ;;  %v822_v31 = vpop.xlane.xlu1 %821  ;;  %v819_v44 = vpop.xlane.xlu0 %818 }
 0x2dc   : > { %v860_v45 = vadd.f32 1e-30, %v822_v31  ;;  %v859_v41 = vadd.f32 1e-30, %v819_v44 }
 0x2de   : > { %1738 = vrsqrt.f32 %v860_v45 }
 0x2df   : > { %1740 = vrsqrt.f32 %v859_v41  ;;  %v828_v60 = vpop.xlane.xlu1 %827  ;;  %v825_v49 = vpop.xlane.xlu0 %824 }
 0x2e0   : > { %v862_v50 = vadd.f32 1e-30, %v828_v60  ;;  %v861_v52 = vadd.f32 1e-30, %v825_v49 }
 0x2e2   : > { %1742 = vrsqrt.f32 %v862_v50 }
 0x2e3   : > { %v1733_v57 = vpop.eup %1732  ;;  %1744 = vrsqrt.f32 %v861_v52  ;;  %v834_v23 = vpop.xlane.xlu1 %833 }
 0x2e4   : > { %v831_v58 = vpop.xlane.xlu0 %830  ;;  %v864_v51 = vadd.f32 1e-30, %v834_v23  ;;  %v2157_v62 = vmul.f32 %v1733_v57, %v2071_v11 }
 0x2e5   : > { %v863_v59 = vadd.f32 1e-30, %v831_v58 }
 0x2e6   : > { %1746 = vrsqrt.f32 %v864_v51  ;;  %905 = vrot.lane.b32.xlu1 %v2157_v62, %s1774_s11 }
 0x2e7   : > { %v1735_v16 = vpop.eup %1734  ;;  %1748 = vrsqrt.f32 %v863_v59  ;;  %v840_v0 = vpop.xlane.xlu1 %839 }
 0x2e8   : > { %v837_v42 = vpop.xlane.xlu0 %836  ;;  %v1737_v21 = vpop.eup %1736  ;;  %v866_v61 = vadd.f32 1e-30, %v840_v0  ;;  %v2162_v25 = vmul.f32 %v1735_v16, %v2075_v55 }
 0x2e9   : > { %v865_v22 = vadd.f32 1e-30, %v837_v42  ;;  %v2165_v26 = vmul.f32 %v1737_v21, %v2077_v24 }
 0x2ea   : > { %1750 = vrsqrt.f32 %v866_v61  ;;  %908 = vrot.lane.b32.xlu0 %v2162_v25, %s1774_s11 }
 0x2eb   : > { %v1739_v11 = vpop.eup %1738  ;;  %1752 = vrsqrt.f32 %v865_v22  ;;  %911 = vrot.lane.b32.xlu1 %v2165_v26, %s1774_s11  ;;  %v846_v27 = vpop.xlane.xlu1 %845 }
 0x2ec   : > { %v843_v17 = vpop.xlane.xlu0 %842  ;;  %v1741_v28 = vpop.eup %1740  ;;  %v868_v12 = vadd.f32 1e-30, %v846_v27  ;;  %v2172_v55 = vmul.f32 %v1739_v11, %v2084_v36 }
 0x2ed   : > { %v867_v18 = vadd.f32 1e-30, %v843_v17  ;;  %v2175_v24 = vmul.f32 %v1741_v28, %v2086_v56 }
 0x2ee   : > { %1754 = vrsqrt.f32 %v868_v12  ;;  %917 = vrot.lane.b32.xlu0 %v2172_v55, %s1774_s11 }
 0x2ef   : > { %v1743_v47 = vpop.eup %1742  ;;  %1756 = vrsqrt.f32 %v867_v18  ;;  %914 = vrot.lane.b32.xlu1 %v2175_v24, %s1774_s11  ;;  %v852_v33 = vpop.xlane.xlu1 %851 }
 0x2f0   : > { %v849_v30 = vpop.xlane.xlu0 %848  ;;  %v1745_v37 = vpop.eup %1744  ;;  %v870_v38 = vadd.f32 1e-30, %v852_v33  ;;  %v2182_v36 = vmul.f32 %v1743_v47, %v2096_v29 }
 0x2f1   : > { %v869_v40 = vadd.f32 1e-30, %v849_v30  ;;  %v2185_v56 = vmul.f32 %v1745_v37, %v2094_v39 }
 0x2f2   : > { %1758 = vrsqrt.f32 %v870_v38  ;;  %923 = vrot.lane.b32.xlu0 %v2182_v36, %s1774_s11 }
 0x2f3   : > { %v1747_v43 = vpop.eup %1746  ;;  %1760 = vrsqrt.f32 %v869_v40  ;;  %920 = vrot.lane.b32.xlu1 %v2185_v56, %s1774_s11 }
 0x2f4   : > { %v855_v34 = vpop.xlane.xlu0 %854  ;;  %v1749_v19 = vpop.eup %1748  ;;  %v2192_v44 = vmul.f32 %v1747_v43, %v2106_v46 }
 0x2f5   : > { %v871_v31 = vadd.f32 1e-30, %v855_v34  ;;  %v2195_v29 = vmul.f32 %v1749_v19, %v2104_v48 }
 0x2f6   : > { %929 = vrot.lane.b32.xlu0 %v2192_v44, %s1774_s11 }
 0x2f7   : > { %1762 = vrsqrt.f32 %v871_v31  ;;  %v1751_v39 = vpop.eup %1750  ;;  %926 = vrot.lane.b32.xlu1 %v2195_v29, %s1774_s11 }
 0x2f8   : > { %v1753_v45 = vpop.eup %1752  ;;  %v2202_v41 = vmul.f32 %v1751_v39, %v2116_v54 }
 0x2f9   : > { %v2205_v60 = vmul.f32 %v1753_v45, %v2114_v53 }
 0x2fa   : > { %935 = vrot.lane.b32.xlu0 %v2202_v41, %s1774_s11 }
 0x2fb   : > { %v1755_v48 = vpop.eup %1754  ;;  %932 = vrot.lane.b32.xlu1 %v2205_v60, %s1774_s11 }
 0x2fc   : > { %v1757_v46 = vpop.eup %1756  ;;  %v2212_v49 = vmul.f32 %v1755_v48, %v2128_v63 }
 0x2fd   : > { %v2215_v50 = vmul.f32 %v1757_v46, %v2125_v35 }
 0x2fe   : > { %941 = vrot.lane.b32.xlu0 %v2212_v49, %s1774_s11 }
 0x2ff   : > { %v1759_v54 = vpop.eup %1758  ;;  %938 = vrot.lane.b32.xlu1 %v2215_v50, %s1774_s11 }
 0x300   : > { %v1761_v53 = vpop.eup %1760  ;;  %v2222_v52 = vmul.f32 %v1759_v54, %v2140_v32 }
 0x301   : > { %v2225_v57 = vmul.f32 %v1761_v53, %v2137_v15 }
 0x302   : > { %947 = vrot.lane.b32.xlu0 %v2222_v52, %s1774_s11 }
 0x303   : > { %944 = vrot.lane.b32.xlu1 %v2225_v57, %s1774_s11 }
 0x304   : > { %v1763_v63 = vpop.eup %1762 }
 0x305   : > { %v2232_v35 = vmul.f32 %v1763_v63, %v2149_v20 }
 0x307   : > { %950 = vrot.lane.b32.xlu1 %v2232_v35, %s1774_s11 }
 0x358   : > { %v906_v23 = vpop.permute.xlu1 %905 }
 0x359   : > { %v907_v32 = vsel %vm904_vm12, %v906_v23, %v2157_v62 }
 0x35a   : > { %953 = vrot.lane.b32.xlu0 %v907_v32, %s1774_s11 }
 0x35c   : > { %v909_v15 = vpop.permute.xlu0 %908 }
 0x35d   : > { %v912_v58 = vpop.permute.xlu1 %911  ;;  %v910_v51 = vsel %vm904_vm12, %v909_v15, %v2162_v25 }
 0x35e   : > { %v913_v59 = vsel %vm904_vm12, %v912_v58, %v2165_v26  ;;  %955 = vrot.lane.b32.xlu1 %v910_v51, %s1774_s11 }
 0x35f   : > { %957 = vrot.lane.b32.xlu0 %v913_v59, %s1774_s11 }
 0x360   : > { %v918_v20 = vpop.permute.xlu0 %917 }
 0x361   : > { %v915_v16 = vpop.permute.xlu1 %914  ;;  %v919_v0 = vsel %vm904_vm12, %v918_v20, %v2172_v55 }
 0x362   : > { %v916_v42 = vsel %vm904_vm12, %v915_v16, %v2175_v24 }
 0x363   : > { %959 = vrot.lane.b32.xlu1 %v916_v42, %s1774_s11  ;;  %961 = vrot.lane.b32.xlu0 %v919_v0, %s1774_s11 }
 0x364   : > { %v924_v21 = vpop.permute.xlu0 %923 }
 0x365   : > { %v921_v61 = vpop.permute.xlu1 %920  ;;  %v925_v22 = vsel %vm904_vm12, %v924_v21, %v2182_v36 }
 0x366   : > { %v922_v11 = vsel %vm904_vm12, %v921_v61, %v2185_v56 }
 0x367   : > { %963 = vrot.lane.b32.xlu1 %v922_v11, %s1774_s11  ;;  %965 = vrot.lane.b32.xlu0 %v925_v22, %s1774_s11 }
 0x368   : > { %v930_v27 = vpop.permute.xlu0 %929 }
 0x369   : > { %v927_v17 = vpop.permute.xlu1 %926  ;;  %v931_v28 = vsel %vm904_vm12, %v930_v27, %v2192_v44 }
 0x36a   : > { %v928_v12 = vsel %vm904_vm12, %v927_v17, %v2195_v29 }
 0x36b   : > { %967 = vrot.lane.b32.xlu1 %v928_v12, %s1774_s11  ;;  %969 = vrot.lane.b32.xlu0 %v931_v28, %s1774_s11 }
 0x36c   : > { %v936_v18 = vpop.permute.xlu0 %935 }
 0x36d   : > { %v933_v47 = vpop.permute.xlu1 %932  ;;  %v937_v33 = vsel %vm904_vm12, %v936_v18, %v2202_v41 }
 0x36e   : > { %v934_v30 = vsel %vm904_vm12, %v933_v47, %v2205_v60 }
 0x36f   : > { %971 = vrot.lane.b32.xlu1 %v934_v30, %s1774_s11  ;;  %973 = vrot.lane.b32.xlu0 %v937_v33, %s1774_s11 }
 0x370   : > { %v942_v37 = vpop.permute.xlu0 %941 }
 0x371   : > { %v939_v38 = vpop.permute.xlu1 %938  ;;  %v943_v40 = vsel %vm904_vm12, %v942_v37, %v2212_v49 }
 0x372   : > { %v940_v43 = vsel %vm904_vm12, %v939_v38, %v2215_v50 }
 0x373   : > { %975 = vrot.lane.b32.xlu1 %v940_v43, %s1774_s11  ;;  %977 = vrot.lane.b32.xlu0 %v943_v40, %s1774_s11 }
 0x374   : > { %v948_v34 = vpop.permute.xlu0 %947 }
 0x375   : > { %v945_v19 = vpop.permute.xlu1 %944  ;;  %v949_v31 = vsel %vm904_vm12, %v948_v34, %v2222_v52 }
 0x376   : > { %v946_v39 = vsel %vm904_vm12, %v945_v19, %v2225_v57 }
 0x377   : > { %979 = vrot.lane.b32.xlu1 %v946_v39, %s1774_s11  ;;  %981 = vrot.lane.b32.xlu0 %v949_v31, %s1774_s11 }
 0x379   : > { %v951_v45 = vpop.permute.xlu1 %950 }
 0x37a   : > { %v952_v48 = vsel %vm904_vm12, %v951_v45, %v2232_v35 }
 0x37b   : > { %983 = vrot.lane.b32.xlu1 %v952_v48, %s1774_s11 }
 0x3cc   : > { %v954_v46 = vpop.permute.xlu0 %953 }
 0x3cd   : > { %v985_v54 = vsel %vm904_vm12, %v954_v46, %v2157_v62 }
 0x3ce   : > { %1017 = vrot.lane.b32.xlu0 %v985_v54, %s1775_s12 }
 0x3d0   : > { %v956_v53 = vpop.permute.xlu1 %955 }
 0x3d1   : > { %v958_v63 = vpop.permute.xlu0 %957  ;;  %v986_v23 = vsel %vm904_vm12, %v956_v53, %v2162_v25 }
 0x3d2   : > { %1019 = vrot.lane.b32.xlu1 %v986_v23, %s1775_s12  ;;  %v987_v32 = vsel %vm904_vm12, %v958_v63, %v2165_v26 }
 0x3d3   : > { %1021 = vrot.lane.b32.xlu0 %v987_v32, %s1775_s12 }
 0x3d5   : > { %v960_v15 = vpop.permute.xlu1 %959  ;;  %v962_v58 = vpop.permute.xlu0 %961 }
 0x3d6   : > { %v988_v51 = vsel %vm904_vm12, %v960_v15, %v2175_v24  ;;  %v989_v59 = vsel %vm904_vm12, %v962_v58, %v2172_v55 }
 0x3d7   : > { %1023 = vrot.lane.b32.xlu1 %v988_v51, %s1775_s12  ;;  %1025 = vrot.lane.b32.xlu0 %v989_v59, %s1775_s12 }
 0x3d9   : > { %v964_v20 = vpop.permute.xlu1 %963  ;;  %v966_v16 = vpop.permute.xlu0 %965 }
 0x3da   : > { %v990_v0 = vsel %vm904_vm12, %v964_v20, %v2185_v56  ;;  %v991_v42 = vsel %vm904_vm12, %v966_v16, %v2182_v36 }
 0x3db   : > { %1027 = vrot.lane.b32.xlu1 %v990_v0, %s1775_s12  ;;  %1029 = vrot.lane.b32.xlu0 %v991_v42, %s1775_s12 }
 0x3dd   : > { %v968_v21 = vpop.permute.xlu1 %967  ;;  %v970_v61 = vpop.permute.xlu0 %969 }
 0x3de   : > { %v992_v22 = vsel %vm904_vm12, %v968_v21, %v2195_v29  ;;  %v993_v11 = vsel %vm904_vm12, %v970_v61, %v2192_v44 }
 0x3df   : > { %1031 = vrot.lane.b32.xlu1 %v992_v22, %s1775_s12  ;;  %1033 = vrot.lane.b32.xlu0 %v993_v11, %s1775_s12 }
 0x3e1   : > { %v972_v27 = vpop.permute.xlu1 %971  ;;  %v974_v17 = vpop.permute.xlu0 %973 }
 0x3e2   : > { %v994_v28 = vsel %vm904_vm12, %v972_v27, %v2205_v60  ;;  %v995_v12 = vsel %vm904_vm12, %v974_v17, %v2202_v41 }
 0x3e3   : > { %1035 = vrot.lane.b32.xlu1 %v994_v28, %s1775_s12  ;;  %1037 = vrot.lane.b32.xlu0 %v995_v12, %s1775_s12 }
 0x3e5   : > { %v976_v18 = vpop.permute.xlu1 %975  ;;  %v978_v47 = vpop.permute.xlu0 %977 }
 0x3e6   : > { %v996_v33 = vsel %vm904_vm12, %v976_v18, %v2215_v50  ;;  %v997_v30 = vsel %vm904_vm12, %v978_v47, %v2212_v49 }
 0x3e7   : > { %1039 = vrot.lane.b32.xlu1 %v996_v33, %s1775_s12  ;;  %1041 = vrot.lane.b32.xlu0 %v997_v30, %s1775_s12 }
 0x3e9   : > { %v980_v37 = vpop.permute.xlu1 %979  ;;  %v982_v38 = vpop.permute.xlu0 %981 }
 0x3ea   : > { %v998_v40 = vsel %vm904_vm12, %v980_v37, %v2225_v57  ;;  %v999_v43 = vsel %vm904_vm12, %v982_v38, %v2222_v52 }
 0x3eb   : > { %1043 = vrot.lane.b32.xlu1 %v998_v40, %s1775_s12  ;;  %1045 = vrot.lane.b32.xlu0 %v999_v43, %s1775_s12 }
 0x3ed   : > { %v984_v34 = vpop.permute.xlu1 %983 }
 0x3ee   : > { %v1000_v19 = vsel %vm904_vm12, %v984_v34, %v2232_v35 }
 0x3ef   : > { %1047 = vrot.lane.b32.xlu1 %v1000_v19, %s1775_s12 }
 0x440   : > { %v1018_v31 = vpop.permute.xlu0 %1017 }
 0x441   : > { %v2333_v39 = vmax.f32 %v2157_v62, %v1018_v31 }
 0x443   : > { %1081 = vrot.lane.b32.xlu0 %v2333_v39, %s1774_s11 }
 0x444   : > { %v1020_v45 = vpop.permute.xlu1 %1019 }
 0x445   : > { %v2338_v48 = vmax.f32 %v2162_v25, %v1020_v45  ;;  %v1022_v46 = vpop.permute.xlu0 %1021 }
 0x446   : > { %v2341_v54 = vmax.f32 %v2165_v26, %v1022_v46  ;;  %v1776_v46 = vmov 1.0  }
 0x447   : > { %1084 = vrot.lane.b32.xlu1 %v2338_v48, %s1774_s11  ;;  %1654 = vmatprep.subr.msk.mxu0 %vm1859_vm1, %v1776_v46 }
 0x448   : > { %1087 = vrot.lane.b32.xlu0 %v2341_v54, %s1774_s11  ;;  %1655 = vmatpush3.msk.msra.mxu0 %vm1859_vm1, %v1776_v46 }
 0x449   : > { %v1024_v53 = vpop.permute.xlu1 %1023  ;;  %v1026_v62 = vpop.permute.xlu0 %1025  ;;  %1656 = vmatprep.subr.msk.mxu0 %vm1855_vm0, %v1776_v46 }
 0x44a   : > { %v2348_v63 = vmax.f32 %v2175_v24, %v1024_v53  ;;  %v2351_v23 = vmax.f32 %v2172_v55, %v1026_v62  ;;  %1657 = vmatpush3.msk.msra.mxu0 %vm1855_vm0, %v1776_v46 }
 0x44c   : > { %1090 = vrot.lane.b32.xlu1 %v2348_v63, %s1774_s11  ;;  %1093 = vrot.lane.b32.xlu0 %v2351_v23, %s1774_s11 }
 0x44d   : > { %v1028_v25 = vpop.permute.xlu1 %1027  ;;  %v1030_v26 = vpop.permute.xlu0 %1029 }
 0x44e   : > { %v2358_v32 = vmax.f32 %v2185_v56, %v1028_v25  ;;  %v2361_v15 = vmax.f32 %v2182_v36, %v1030_v26 }
 0x450   : > { %1096 = vrot.lane.b32.xlu1 %v2358_v32, %s1774_s11  ;;  %1099 = vrot.lane.b32.xlu0 %v2361_v15, %s1774_s11 }
 0x451   : > { %v1032_v55 = vpop.permute.xlu1 %1031  ;;  %v1034_v24 = vpop.permute.xlu0 %1033 }
 0x452   : > { %v2368_v58 = vmax.f32 %v2195_v29, %v1032_v55  ;;  %v2371_v51 = vmax.f32 %v2192_v44, %v1034_v24 }
 0x454   : > { %1102 = vrot.lane.b32.xlu1 %v2368_v58, %s1774_s11  ;;  %1105 = vrot.lane.b32.xlu0 %v2371_v51, %s1774_s11 }
 0x455   : > { %v1036_v36 = vpop.permute.xlu1 %1035  ;;  %v1038_v56 = vpop.permute.xlu0 %1037 }
 0x456   : > { %v2378_v59 = vmax.f32 %v2205_v60, %v1036_v36  ;;  %v2381_v20 = vmax.f32 %v2202_v41, %v1038_v56 }
 0x458   : > { %1108 = vrot.lane.b32.xlu1 %v2378_v59, %s1774_s11  ;;  %1111 = vrot.lane.b32.xlu0 %v2381_v20, %s1774_s11 }
 0x459   : > { %v1040_v44 = vpop.permute.xlu1 %1039  ;;  %v1042_v29 = vpop.permute.xlu0 %1041 }
 0x45a   : > { %v2388_v16 = vmax.f32 %v2215_v50, %v1040_v44  ;;  %v2391_v0 = vmax.f32 %v2212_v49, %v1042_v29 }
 0x45c   : > { %1114 = vrot.lane.b32.xlu1 %v2388_v16, %s1774_s11  ;;  %1117 = vrot.lane.b32.xlu0 %v2391_v0, %s1774_s11 }
 0x45d   : > { %v1044_v41 = vpop.permute.xlu1 %1043  ;;  %v1046_v60 = vpop.permute.xlu0 %1045 }
 0x45e   : > { %v2398_v42 = vmax.f32 %v2225_v57, %v1044_v41  ;;  %v2401_v21 = vmax.f32 %v2222_v52, %v1046_v60 }
 0x460   : > { %1120 = vrot.lane.b32.xlu1 %v2398_v42, %s1774_s11  ;;  %1123 = vrot.lane.b32.xlu0 %v2401_v21, %s1774_s11 }
 0x461   : > { %v1048_v49 = vpop.permute.xlu1 %1047 }
 0x462   : > { %v2408_v50 = vmax.f32 %v2232_v35, %v1048_v49 }
 0x464   : > { %1126 = vrot.lane.b32.xlu1 %v2408_v50, %s1774_s11 }
 0x4b5   : > { %v1082_v61 = vpop.permute.xlu0 %1081 }
 0x4b6   : > { %v1083_v57 = vsel %vm904_vm12, %v1082_v61, %v2333_v39 }
 0x4b7   : > { %1129 = vrot.lane.b32.xlu0 %v1083_v57, %s1774_s11 }
 0x4b9   : > { %v1085_v52 = vpop.permute.xlu1 %1084 }
 0x4ba   : > { %v1088_v22 = vpop.permute.xlu0 %1087  ;;  %v1086_v11 = vsel %vm904_vm12, %v1085_v52, %v2338_v48 }
 0x4bb   : > { %v1089_v27 = vsel %vm904_vm12, %v1088_v22, %v2341_v54  ;;  %1131 = vrot.lane.b32.xlu1 %v1086_v11, %s1774_s11 }
 0x4bc   : > { %1133 = vrot.lane.b32.xlu0 %v1089_v27, %s1774_s11 }
 0x4be   : > { %v1091_v35 = vpop.permute.xlu1 %1090  ;;  %v1094_v17 = vpop.permute.xlu0 %1093 }
 0x4bf   : > { %v1092_v28 = vsel %vm904_vm12, %v1091_v35, %v2348_v63  ;;  %v1095_v12 = vsel %vm904_vm12, %v1094_v17, %v2351_v23 }
 0x4c0   : > { %1135 = vrot.lane.b32.xlu1 %v1092_v28, %s1774_s11  ;;  %1137 = vrot.lane.b32.xlu0 %v1095_v12, %s1774_s11 }
 0x4c2   : > { %v1097_v18 = vpop.permute.xlu1 %1096  ;;  %v1100_v47 = vpop.permute.xlu0 %1099 }
 0x4c3   : > { %v1098_v33 = vsel %vm904_vm12, %v1097_v18, %v2358_v32  ;;  %v1101_v30 = vsel %vm904_vm12, %v1100_v47, %v2361_v15 }
 0x4c4   : > { %1139 = vrot.lane.b32.xlu1 %v1098_v33, %s1774_s11  ;;  %1141 = vrot.lane.b32.xlu0 %v1101_v30, %s1774_s11 }
 0x4c6   : > { %v1103_v37 = vpop.permute.xlu1 %1102  ;;  %v1106_v38 = vpop.permute.xlu0 %1105 }
 0x4c7   : > { %v1104_v40 = vsel %vm904_vm12, %v1103_v37, %v2368_v58  ;;  %v1107_v43 = vsel %vm904_vm12, %v1106_v38, %v2371_v51 }
 0x4c8   : > { %1143 = vrot.lane.b32.xlu1 %v1104_v40, %s1774_s11  ;;  %1145 = vrot.lane.b32.xlu0 %v1107_v43, %s1774_s11 }
 0x4ca   : > { %v1109_v34 = vpop.permute.xlu1 %1108  ;;  %v1112_v19 = vpop.permute.xlu0 %1111 }
 0x4cb   : > { %v1110_v31 = vsel %vm904_vm12, %v1109_v34, %v2378_v59  ;;  %v1113_v45 = vsel %vm904_vm12, %v1112_v19, %v2381_v20 }
 0x4cc   : > { %1147 = vrot.lane.b32.xlu1 %v1110_v31, %s1774_s11  ;;  %1149 = vrot.lane.b32.xlu0 %v1113_v45, %s1774_s11 }
 0x4ce   : > { %v1115_v53 = vpop.permute.xlu1 %1114  ;;  %v1118_v62 = vpop.permute.xlu0 %1117 }
 0x4cf   : > { %v1116_v25 = vsel %vm904_vm12, %v1115_v53, %v2388_v16  ;;  %v1119_v26 = vsel %vm904_vm12, %v1118_v62, %v2391_v0 }
 0x4d0   : > { %1151 = vrot.lane.b32.xlu1 %v1116_v25, %s1774_s11  ;;  %1153 = vrot.lane.b32.xlu0 %v1119_v26, %s1774_s11 }
 0x4d2   : > { %v1121_v55 = vpop.permute.xlu1 %1120  ;;  %v1124_v24 = vpop.permute.xlu0 %1123 }
 0x4d3   : > { %v1122_v36 = vsel %vm904_vm12, %v1121_v55, %v2398_v42  ;;  %v1125_v56 = vsel %vm904_vm12, %v1124_v24, %v2401_v21 }
 0x4d4   : > { %1155 = vrot.lane.b32.xlu1 %v1122_v36, %s1774_s11  ;;  %1157 = vrot.lane.b32.xlu0 %v1125_v56, %s1774_s11 }
 0x4d6   : > { %v1127_v44 = vpop.permute.xlu1 %1126 }
 0x4d7   : > { %v1128_v29 = vsel %vm904_vm12, %v1127_v44, %v2408_v50 }
 0x4d8   : > { %1159 = vrot.lane.b32.xlu1 %v1128_v29, %s1774_s11 }
 0x529   : > { %v1130_v41 = vpop.permute.xlu0 %1129 }
 0x52a   : > { %v1161_v60 = vsel %vm904_vm12, %v1130_v41, %v2333_v39 }
 0x52b   : > { %1193 = vrot.lane.b32.xlu0 %v1161_v60, %s1777_s13 }
 0x52d   : > { %v1132_v49 = vpop.permute.xlu1 %1131 }
 0x52e   : > { %v1162_v61 = vsel %vm904_vm12, %v1132_v49, %v2338_v48  ;;  %v1134_v57 = vpop.permute.xlu0 %1133 }
 0x52f   : > { %v1163_v52 = vsel %vm904_vm12, %v1134_v57, %v2341_v54  ;;  %1195 = vrot.lane.b32.xlu1 %v1162_v61, %s1777_s13 }
 0x530   : > { %1197 = vrot.lane.b32.xlu0 %v1163_v52, %s1777_s13 }
 0x532   : > { %v1136_v22 = vpop.permute.xlu1 %1135  ;;  %v1138_v11 = vpop.permute.xlu0 %1137 }
 0x533   : > { %v1164_v27 = vsel %vm904_vm12, %v1136_v22, %v2348_v63  ;;  %v1165_v35 = vsel %vm904_vm12, %v1138_v11, %v2351_v23 }
 0x534   : > { %1199 = vrot.lane.b32.xlu1 %v1164_v27, %s1777_s13  ;;  %1201 = vrot.lane.b32.xlu0 %v1165_v35, %s1777_s13 }
 0x536   : > { %v1140_v17 = vpop.permute.xlu1 %1139  ;;  %v1142_v28 = vpop.permute.xlu0 %1141 }
 0x537   : > { %v1166_v12 = vsel %vm904_vm12, %v1140_v17, %v2358_v32  ;;  %v1167_v18 = vsel %vm904_vm12, %v1142_v28, %v2361_v15 }
 0x538   : > { %1203 = vrot.lane.b32.xlu1 %v1166_v12, %s1777_s13  ;;  %1205 = vrot.lane.b32.xlu0 %v1167_v18, %s1777_s13 }
 0x53a   : > { %v1144_v47 = vpop.permute.xlu1 %1143  ;;  %v1146_v33 = vpop.permute.xlu0 %1145 }
 0x53b   : > { %v1168_v30 = vsel %vm904_vm12, %v1144_v47, %v2368_v58  ;;  %v1169_v37 = vsel %vm904_vm12, %v1146_v33, %v2371_v51 }
 0x53c   : > { %1207 = vrot.lane.b32.xlu1 %v1168_v30, %s1777_s13  ;;  %1209 = vrot.lane.b32.xlu0 %v1169_v37, %s1777_s13 }
 0x53e   : > { %v1148_v38 = vpop.permute.xlu1 %1147  ;;  %v1150_v40 = vpop.permute.xlu0 %1149 }
 0x53f   : > { %v1170_v43 = vsel %vm904_vm12, %v1148_v38, %v2378_v59  ;;  %v1171_v34 = vsel %vm904_vm12, %v1150_v40, %v2381_v20 }
 0x540   : > { %1211 = vrot.lane.b32.xlu1 %v1170_v43, %s1777_s13  ;;  %1213 = vrot.lane.b32.xlu0 %v1171_v34, %s1777_s13 }
 0x542   : > { %v1152_v19 = vpop.permute.xlu1 %1151  ;;  %v1154_v31 = vpop.permute.xlu0 %1153 }
 0x543   : > { %v1172_v45 = vsel %vm904_vm12, %v1152_v19, %v2388_v16  ;;  %v1173_v46 = vsel %vm904_vm12, %v1154_v31, %v2391_v0 }
 0x544   : > { %1215 = vrot.lane.b32.xlu1 %v1172_v45, %s1777_s13  ;;  %1217 = vrot.lane.b32.xlu0 %v1173_v46, %s1777_s13 }
 0x546   : > { %v1156_v53 = vpop.permute.xlu1 %1155  ;;  %v1158_v62 = vpop.permute.xlu0 %1157 }
 0x547   : > { %v1174_v25 = vsel %vm904_vm12, %v1156_v53, %v2398_v42  ;;  %v1175_v26 = vsel %vm904_vm12, %v1158_v62, %v2401_v21 }
 0x548   : > { %1219 = vrot.lane.b32.xlu1 %v1174_v25, %s1777_s13  ;;  %1221 = vrot.lane.b32.xlu0 %v1175_v26, %s1777_s13 }
 0x54a   : > { %v1160_v55 = vpop.permute.xlu1 %1159 }
 0x54b   : > { %v1176_v24 = vsel %vm904_vm12, %v1160_v55, %v2408_v50 }
 0x54c   : > { %1223 = vrot.lane.b32.xlu1 %v1176_v24, %s1777_s13 }
 0x59d   : > { %v1194_v36 = vpop.permute.xlu0 %1193 }
 0x59e   : > { %v1241_v56 = vmax.f32 %v2333_v39, %v1194_v36 }
 0x5a0   : > { %1658 = vmatprep.mubr.msk.f32.mxu0 %vm65_vm2, %v1241_v56 }
 0x5a1   : > { %v1196_v44 = vpop.permute.xlu1 %1195 }
 0x5a2   : > { %v1242_v29 = vmax.f32 %v2338_v48, %v1196_v44  ;;  %v1198_v41 = vpop.permute.xlu0 %1197 }
 0x5a3   : > { %v1243_v60 = vmax.f32 %v2341_v54, %v1198_v41 }
 0x5a4   : > { %1659 = vmatmul.mubr.msk.f32.vlgmr.msra.gmra.mxu0 %vm65_vm2, %v1242_v29 }
 0x5a5   : > { %1661 = vmatprep.mubr.msk.f32.mxu0 %vm65_vm2, %v1243_v60 }
 0x5a6   : > { %v1200_v49 = vpop.permute.xlu1 %1199  ;;  %v1202_v61 = vpop.permute.xlu0 %1201 }
 0x5a7   : > { %v1244_v57 = vmax.f32 %v2348_v63, %v1200_v49  ;;  %v1245_v52 = vmax.f32 %v2351_v23, %v1202_v61 }
 0x5a9   : > { %1662 = vmatmul.mubr.msk.f32.gmra.mxu0 %vm65_vm2, %v1244_v57 }
 0x5aa   : > { %v1204_v39 = vpop.permute.xlu1 %1203  ;;  %1664 = vmatprep.mubr.msk.f32.mxu0 %vm65_vm2, %v1245_v52  ;;  %v1206_v22 = vpop.permute.xlu0 %1205 }
 0x5ab   : > { %v1246_v48 = vmax.f32 %v2358_v32, %v1204_v39  ;;  %v1247_v54 = vmax.f32 %v2361_v15, %v1206_v22 }
 0x5ad   : > { %1665 = vmatmul.mubr.msk.f32.gmra.mxu0 %vm65_vm2, %v1246_v48 }
 0x5ae   : > { %v1208_v11 = vpop.permute.xlu1 %1207  ;;  %1667 = vmatprep.mubr.msk.f32.mxu0 %vm65_vm2, %v1247_v54  ;;  %v1210_v27 = vpop.permute.xlu0 %1209 }
 0x5af   : > { %v1248_v63 = vmax.f32 %v2368_v58, %v1208_v11  ;;  %v1249_v23 = vmax.f32 %v2371_v51, %v1210_v27 }
 0x5b1   : > { %1668 = vmatmul.mubr.msk.f32.gmra.mxu0 %vm65_vm2, %v1248_v63 }
 0x5b2   : > { %v1212_v35 = vpop.permute.xlu1 %1211  ;;  %1670 = vmatprep.mubr.msk.f32.mxu0 %vm65_vm2, %v1249_v23  ;;  %v1214_v17 = vpop.permute.xlu0 %1213 }
 0x5b3   : > { %v1250_v32 = vmax.f32 %v2378_v59, %v1212_v35  ;;  %v1251_v15 = vmax.f32 %v2381_v20, %v1214_v17 }
 0x5b5   : > { %1671 = vmatmul.mubr.msk.f32.gmra.mxu0 %vm65_vm2, %v1250_v32 }
 0x5b6   : > { %v1216_v28 = vpop.permute.xlu1 %1215  ;;  %1673 = vmatprep.mubr.msk.f32.mxu0 %vm65_vm2, %v1251_v15  ;;  %v1218_v12 = vpop.permute.xlu0 %1217 }
 0x5b7   : > { %v1252_v58 = vmax.f32 %v2388_v16, %v1216_v28  ;;  %v1253_v51 = vmax.f32 %v2391_v0, %v1218_v12 }
 0x5b9   : > { %1674 = vmatmul.mubr.msk.f32.gmra.mxu0 %vm65_vm2, %v1252_v58 }
 0x5ba   : > { %v1220_v18 = vpop.permute.xlu1 %1219  ;;  %1676 = vmatprep.mubr.msk.f32.mxu0 %vm65_vm2, %v1253_v51  ;;  %v1222_v47 = vpop.permute.xlu0 %1221 }
 0x5bb   : > { %v1254_v59 = vmax.f32 %v2398_v42, %v1220_v18  ;;  %v1255_v20 = vmax.f32 %v2401_v21, %v1222_v47 }
 0x5bd   : > { %1677 = vmatmul.mubr.msk.f32.gmra.mxu0 %vm65_vm2, %v1254_v59 }
 0x5be   : > { %v1224_v33 = vpop.permute.xlu1 %1223  ;;  %1679 = vmatprep.mubr.msk.f32.mxu0 %vm65_vm2, %v1255_v20 }
 0x5bf   : > { %v1256_v30 = vmax.f32 %v2408_v50, %v1224_v33 }
 0x5c1   : > { %1680 = vmatmul.mubr.msk.f32.gmra.mxu0 %vm65_vm2, %v1256_v30 }
 0x664   : > { %v1660_v16 = vpop.f32.mrf.mxu0 }
 0x665   : > { %1453 = vst.msk [vmem:[%s2553_s16 + $0x8] sm:$0xff] %vm1451_vm13, %v1660_v16 }
 0x666   : > { %v1371_v0 = vpop.f32.mrf.mxu0 }
 0x667   : > { %1452 = vst.msk [vmem:[%s2553_s16] sm:$0xff] %vm1451_vm13, %v1371_v0 }
 0x669   : > { %v1663_v42 = vpop.f32.mrf.mxu0 }
 0x66a   : > { %1455 = vst.msk [vmem:[%s2553_s16 + $0x18] sm:$0xff] %vm1451_vm13, %v1663_v42 }
 0x66b   : > { %v1381_v21 = vpop.f32.mrf.mxu0 }
 0x66c   : > { %1454 = vst.msk [vmem:[%s2553_s16 + $0x10] sm:$0xff] %vm1451_vm13, %v1381_v21 }
 0x66d   : > { %v1666_v50 = vpop.f32.mrf.mxu0 }
 0x66e   : > { %1457 = vst.msk [vmem:[%s2553_s16 + $0x28] sm:$0xff] %vm1451_vm13, %v1666_v50 }
 0x66f   : > { %v1391_v37 = vpop.f32.mrf.mxu0 }
 0x670   : > { %1456 = vst.msk [vmem:[%s2553_s16 + $0x20] sm:$0xff] %vm1451_vm13, %v1391_v37 }
 0x671   : > { %v1669_v38 = vpop.f32.mrf.mxu0 }
 0x672   : > { %1459 = vst.msk [vmem:[%s2553_s16 + $0x38] sm:$0xff] %vm1451_vm13, %v1669_v38 }
 0x673   : > { %v1401_v40 = vpop.f32.mrf.mxu0 }
 0x674   : > { %1458 = vst.msk [vmem:[%s2553_s16 + $0x30] sm:$0xff] %vm1451_vm13, %v1401_v40 }
 0x675   : > { %v1672_v43 = vpop.f32.mrf.mxu0 }
 0x676   : > { %1461 = vst.msk [vmem:[%s2553_s16 + $0x48] sm:$0xff] %vm1451_vm13, %v1672_v43 }
 0x677   : > { %v1411_v34 = vpop.f32.mrf.mxu0 }
 0x678   : > { %1460 = vst.msk [vmem:[%s2553_s16 + $0x40] sm:$0xff] %vm1451_vm13, %v1411_v34 }
 0x679   : > { %v1675_v19 = vpop.f32.mrf.mxu0 }
 0x67a   : > { %1463 = vst.msk [vmem:[%s2553_s16 + $0x58] sm:$0xff] %vm1451_vm13, %v1675_v19 }
 0x67b   : > { %v1421_v31 = vpop.f32.mrf.mxu0 }
 0x67c   : > { %1462 = vst.msk [vmem:[%s2553_s16 + $0x50] sm:$0xff] %vm1451_vm13, %v1421_v31 }
 0x67d   : > { %v1678_v45 = vpop.f32.mrf.mxu0 }
 0x67e   : > { %1465 = vst.msk [vmem:[%s2553_s16 + $0x68] sm:$0xff] %vm1451_vm13, %v1678_v45 }
 0x67f   : > { %v1431_v46 = vpop.f32.mrf.mxu0 }
 0x680   : > { %1464 = vst.msk [vmem:[%s2553_s16 + $0x60] sm:$0xff] %vm1451_vm13, %v1431_v46  ;;  %44 = sbr.rel (!%p42_p0) target bundleno = 7 (0x7), region = 49 }
 0x681   : > { %v1681_v53 = vpop.f32.mrf.mxu0 }
 0x682   : > { %1467 = vst.msk [vmem:[%s2553_s16 + $0x78] sm:$0xff] %vm1451_vm13, %v1681_v53 }
 0x683   : > { %v1441_v62 = vpop.f32.mrf.mxu0 }
 0x684   : > { %1466 = vst.msk [vmem:[%s2553_s16 + $0x70] sm:$0xff] %vm1451_vm13, %v1441_v62 }

</bundles_post_ra>
